<compile_context>
chip_gen: v7x
topology: tpu7x:2x2x1
jax: 0.10.0
libtpu: 0.0.40
codegen_flags: <defaults>
</compile_context>

<pallas_src>
import functools

import jax
import jax.numpy as jnp
from jax import lax
from jax.experimental import pallas as pl
from jax.experimental.pallas import tpu as pltpu


def _round_up(x, m):
    return ((x + m - 1) // m) * m


def _spat_attn_block(x, wq, bq, wk, bk, wvg, bvg, bns, bnb,
                     key_mask, n_pad, b_blk):
    """One SpatAttn_ layer on a lane-dense (C, b_blk*n_pad) f32 slab.

    Weights are bf16 (gamma already folded into wvg/bvg); biases / BN are f32.
    Attention is computed per image, so only the block-diagonal tiles exist.
    """
    xb = x.astype(jnp.bfloat16)

    # 1x1 convolutions == channel matmuls, shared across all images of the block.
    q = jnp.dot(wq, xb, preferred_element_type=jnp.float32) + bq     # (Cq, L)
    k = jnp.dot(wk, xb, preferred_element_type=jnp.float32) + bk     # (Cq, L)
    v = jnp.dot(wvg, xb, preferred_element_type=jnp.float32) + bvg   # (C,  L)
    qb = q.astype(jnp.bfloat16)
    kb = k.astype(jnp.bfloat16)
    vb = v.astype(jnp.bfloat16)

    outs = []
    for b in range(b_blk):                     # static unroll; b_blk is small
        lo = b * n_pad
        qi = qb[:, lo:lo + n_pad]              # 128-aligned lane slices
        ki = kb[:, lo:lo + n_pad]
        vi = vb[:, lo:lo + n_pad]

        # energy[i, j] = <q[:, i], k[:, j]>  (contract channels; no transpose copy)
        e = lax.dot_general(qi, ki, (((0,), (0,)), ((), ())),
                            preferred_element_type=jnp.float32)      # (n_pad, n_pad)
        if key_mask is not None:
            e = e + key_mask                   # mask padded key columns (f32, -1e30)
        e = e - jnp.max(e, axis=-1, keepdims=True)
        p = jnp.exp(e)
        attn = p * pl.reciprocal(jnp.sum(p, axis=-1, keepdims=True), approx=True)

        # out[:, i] = sum_j v[:, j] * attn[i, j]  ==  v @ attn^T (no transpose copy)
        oi = lax.dot_general(vi, attn.astype(jnp.bfloat16),
                             (((1,), (1,)), ((), ())),
                             preferred_element_type=jnp.float32)     # (C, n_pad)
        outs.append(oi)

    out = outs[0] if b_blk == 1 else jnp.concatenate(outs, axis=1)   # (C, L)
    out = jnp.maximum(out, 0.0)            # ReLU (gamma already folded into v)
    return out * bns + bnb                 # eval-mode BatchNorm2d (scale/bias folded)


def _sares_kernel(x_ref,
                  wq1_ref, bq1_ref, wk1_ref, bk1_ref, wv1_ref, bv1_ref,
                  bns1_ref, bnb1_ref,
                  wq2_ref, bq2_ref, wk2_ref, bk2_ref, wv2_ref, bv2_ref,
                  bns2_ref, bnb2_ref,
                  o_ref, *, n_valid, n_pad, b_blk):
    x = x_ref[...]                                                    # (C, L) f32

    # Additive key-padding mask: ONE integer compare, shared by both layers
    # and all images.  Skipped entirely when N is already a multiple of 128.
    if n_pad > n_valid:
        col = lax.broadcasted_iota(jnp.int32, (1, n_pad), 1)
        key_mask = jnp.where(col < n_valid, 0.0, -1e30)               # f32 (1, n_pad)
    else:
        key_mask = None

    y = _spat_attn_block(x, wq1_ref[...], bq1_ref[...], wk1_ref[...],
                         bk1_ref[...], wv1_ref[...], bv1_ref[...],
                         bns1_ref[...], bnb1_ref[...], key_mask, n_pad, b_blk)
    y = _spat_attn_block(y, wq2_ref[...], bq2_ref[...], wk2_ref[...],
                         bk2_ref[...], wv2_ref[...], bv2_ref[...],
                         bns2_ref[...], bnb2_ref[...], key_mask, n_pad, b_blk)

    o_ref[...] = jnp.maximum(y + x, 0.0)                              # residual + ReLU


def _fold_layer_params(p, cq_pad):
    """Fold gamma into the value conv, pad q/k rows to cq_pad, cast weights to bf16."""
    g = p["gamma"][0]
    cq = p["wq"].shape[0]
    rpad = ((0, cq_pad - cq), (0, 0))
    wq = jnp.pad(p["wq"], rpad).astype(jnp.bfloat16)
    bq = jnp.pad(p["bq"], rpad)
    wk = jnp.pad(p["wk"], rpad).astype(jnp.bfloat16)
    bk = jnp.pad(p["bk"], rpad)
    wv = (g * p["wv"]).astype(jnp.bfloat16)
    bv = g * p["bv"]
    return (wq, bq, wk, bk, wv, bv, p["bn_scale"], p["bn_bias"])


def _block_working_bytes(C, cq_pad, n_pad, b_blk):
    """Coarse per-grid-step VMEM working-set estimate (bytes)."""
    L = b_blk * n_pad
    io = 2 * 2 * C * L * 4             # double-buffered x in + out blocks
    qkv = (2 * cq_pad + C) * L * 6     # f32 accumulators + bf16 copies
    inter = 2 * C * L * 4              # layer-1 output slab + residual temporaries
    attn = 4 * n_pad * n_pad * 4       # per-image energy + attn (x2 headroom)
    return io + qkv + inter + attn


def _pick_batch_block(B, C, cq_pad, n_pad, budget_bytes=16 << 20):
    """Largest divisor of B fitting the VMEM budget, keeping >= 2 grid steps
    when the batch allows (so both v7x TensorCores get work; the cost of one
    extra grid step on single-TC v5e/v6e is ~0.35 us, i.e. negligible)."""
    best = 1
    for blk in range(1, B + 1):
        if B % blk:
            continue
        if B >= 2 and B // blk < 2:
            continue
        if _block_working_bytes(C, cq_pad, n_pad, blk) > budget_bytes:
            continue
        best = blk
    return best


def sares_forward(x, params1, params2):
    """SARes.forward: relu(sa2(sa1(x)) + x); x is NCHW (B, C, H, W)."""
    B, C, H, W = x.shape
    N = H * W
    n_pad = _round_up(N, 128)
    cq = params1["wq"].shape[0]
    cq_pad = max(8, _round_up(cq, 8))

    b_blk = _pick_batch_block(B, C, cq_pad, n_pad)
    L = b_blk * n_pad

    # Lane-dense layout: (C, B*n_pad); image b occupies lanes [b*n_pad, (b+1)*n_pad).
    x_cbn = jnp.transpose(x, (1, 0, 2, 3)).reshape(C, B, N)
    if n_pad > N:
        x_cbn = jnp.pad(x_cbn, ((0, 0), (0, 0), (0, n_pad - N)))
    x_slab = x_cbn.reshape(C, B * n_pad)

    p1 = _fold_layer_params(params1, cq_pad)
    p2 = _fold_layer_params(params2, cq_pad)

    weight_bytes = sum(int(a.size) * a.dtype.itemsize for a in (*p1, *p2))
    vmem_limit = int(min(48 << 20,
                         max(24 << 20,
                             2 * _block_working_bytes(C, cq_pad, n_pad, b_blk)
                             + 2 * weight_bytes)))

    def const_spec(arr):
        nd = arr.ndim
        return pl.BlockSpec(arr.shape, lambda g, _nd=nd: (0,) * _nd)

    kernel = functools.partial(_sares_kernel, n_valid=N, n_pad=n_pad, b_blk=b_blk)

    out_slab = pl.pallas_call(
        kernel,
        out_shape=jax.ShapeDtypeStruct((C, B * n_pad), jnp.float32),
        grid=(B // b_blk,),
        in_specs=[pl.BlockSpec((C, L), lambda g: (0, g))]            # x slab block
                 + [const_spec(a) for a in (*p1, *p2)],              # VMEM-resident weights
        out_specs=pl.BlockSpec((C, L), lambda g: (0, g)),
        compiler_params=pltpu.CompilerParams(
            dimension_semantics=("parallel",),
            vmem_limit_bytes=vmem_limit),
    )(x_slab, *p1, *p2)

    out = out_slab.reshape(C, B, n_pad)[:, :, :N]
    return jnp.transpose(out, (1, 0, 2)).reshape(B, C, H, W)


# --------------------------- pure-JAX reference ---------------------------

def _spat_attn_ref(x_flat, p):
    """Pure-JAX SpatAttn_ on (B, C, N); mirrors the PyTorch module."""
    q = jnp.einsum('qc,bcn->bqn', p["wq"], x_flat) + p["bq"][None]
    k = jnp.einsum('qc,bcn->bqn', p["wk"], x_flat) + p["bk"][None]
    v = jnp.einsum('vc,bcn->bvn', p["wv"], x_flat) + p["bv"][None]
    energy = jnp.einsum('bqi,bqj->bij', q, k)
    attn = jax.nn.softmax(energy, axis=-1)
    out = jnp.einsum('bcj,bij->bci', v, attn)
    out = p["gamma"][0] * out
    out = jnp.maximum(out, 0.0)
    return out * p["bn_scale"][None] + p["bn_bias"][None]


def sares_reference(x, params1, params2):
    B, C, H, W = x.shape
    xf = x.reshape(B, C, H * W)
    y = _spat_attn_ref(_spat_attn_ref(xf, params1), params2)
    return jnp.maximum(y + xf, 0.0).reshape(B, C, H, W)


# --------------------------- synthetic parameters ---------------------------

def make_spat_attn_params(key, in_dim, ratio=8):
    """Deterministic synthetic parameters for one SpatAttn_ layer."""
    cq = in_dim // ratio
    ks = jax.random.split(key, 10)
    eps = 1e-5
    wq = 0.1 * jax.random.normal(ks[0], (cq, in_dim), jnp.float32)
    bq = 0.1 * jax.random.normal(ks[1], (cq, 1), jnp.float32)
    wk = 0.1 * jax.random.normal(ks[2], (cq, in_dim), jnp.float32)
    bk = 0.1 * jax.random.normal(ks[3], (cq, 1), jnp.float32)
    wv = 0.1 * jax.random.normal(ks[4], (in_dim, in_dim), jnp.float32)
    bv = 0.1 * jax.random.normal(ks[5], (in_dim, 1), jnp.float32)
    # gamma is torch.zeros(1) in __init__; use a nonzero deterministic value so
    # the attention branch actually contributes in this synthetic test.
    gamma = 0.5 + 0.1 * jax.random.normal(ks[6], (1,), jnp.float32)
    bn_w = 1.0 + 0.1 * jax.random.normal(ks[7], (in_dim, 1), jnp.float32)
    bn_b = 0.1 * jax.random.normal(ks[8], (in_dim, 1), jnp.float32)
    run_mean = 0.1 * jax.random.normal(ks[9], (in_dim, 1), jnp.float32)
    run_var = jnp.ones((in_dim, 1), jnp.float32)
    bn_scale = bn_w / jnp.sqrt(run_var + eps)
    bn_bias = bn_b - run_mean * bn_scale
    return {"wq": wq, "bq": bq, "wk": wk, "bk": bk, "wv": wv, "bv": bv,
            "gamma": gamma, "bn_scale": bn_scale, "bn_bias": bn_bias}


if __name__ == "__main__":
    key = jax.random.PRNGKey(0)
    k_x, k_p1, k_p2 = jax.random.split(key, 3)

    # in_dim=16, ratio=8 -> C//ratio = 2 (padded to 8 rows); N = H*W = 64 padded
    # to 128 lanes; b_blk = 2 images/step -> grid extent 2 (both v7x TensorCores).
    B, C, H, W = 4, 16, 8, 8
    x = jax.random.normal(k_x, (B, C, H, W), jnp.float32)

    params1 = make_spat_attn_params(k_p1, C, ratio=8)
    params2 = make_spat_attn_params(k_p2, C, ratio=8)

    out = jax.jit(sares_forward)(x, params1, params2)
    jax.block_until_ready(out)
    assert out.shape == (B, C, H, W)

    ref = sares_reference(x, params1, params2)
    assert jnp.allclose(out, ref, atol=5e-2, rtol=5e-2), \
        float(jnp.max(jnp.abs(out - ref)))

    print("KERNEL_OK")
</pallas_src>

<mosaic_0001>
module attributes {stable_mosaic.version = 11 : i64} {
  func.func @_sares_kernel(%arg0: i32, %arg1: memref<16x256xf32, #tpu.memory_space<vmem>>, %arg2: memref<8x16xbf16, #tpu.memory_space<vmem>>, %arg3: memref<8x1xf32, #tpu.memory_space<vmem>>, %arg4: memref<8x16xbf16, #tpu.memory_space<vmem>>, %arg5: memref<8x1xf32, #tpu.memory_space<vmem>>, %arg6: memref<16x16xbf16, #tpu.memory_space<vmem>>, %arg7: memref<16x1xf32, #tpu.memory_space<vmem>>, %arg8: memref<16x1xf32, #tpu.memory_space<vmem>>, %arg9: memref<16x1xf32, #tpu.memory_space<vmem>>, %arg10: memref<8x16xbf16, #tpu.memory_space<vmem>>, %arg11: memref<8x1xf32, #tpu.memory_space<vmem>>, %arg12: memref<8x16xbf16, #tpu.memory_space<vmem>>, %arg13: memref<8x1xf32, #tpu.memory_space<vmem>>, %arg14: memref<16x16xbf16, #tpu.memory_space<vmem>>, %arg15: memref<16x1xf32, #tpu.memory_space<vmem>>, %arg16: memref<16x1xf32, #tpu.memory_space<vmem>>, %arg17: memref<16x1xf32, #tpu.memory_space<vmem>>, %arg18: memref<16x256xf32, #tpu.memory_space<vmem>>) attributes {dimension_semantics = [#tpu.dimension_semantics<parallel>], iteration_bounds = array<i64: 2>, scalar_prefetch = 0 : i64, scratch_operands = 0 : i64, tpu.core_type = #tpu.core_type<tc>, window_params = [{transform_indices = @transform_0, window_bounds = array<i64: 16, 256>}, {pipeline_mode = #tpu.pipeline_mode<synchronous>, transform_indices = @transform_1, window_bounds = array<i64: 8, 16>}, {pipeline_mode = #tpu.pipeline_mode<synchronous>, transform_indices = @transform_2, window_bounds = array<i64: 8, 1>}, {pipeline_mode = #tpu.pipeline_mode<synchronous>, transform_indices = @transform_3, window_bounds = array<i64: 8, 16>}, {pipeline_mode = #tpu.pipeline_mode<synchronous>, transform_indices = @transform_4, window_bounds = array<i64: 8, 1>}, {pipeline_mode = #tpu.pipeline_mode<synchronous>, transform_indices = @transform_5, window_bounds = array<i64: 16, 16>}, {pipeline_mode = #tpu.pipeline_mode<synchronous>, transform_indices = @transform_6, window_bounds = array<i64: 16, 1>}, {pipeline_mode = #tpu.pipeline_mode<synchronous>, transform_indices = @transform_7, window_bounds = array<i64: 16, 1>}, {pipeline_mode = #tpu.pipeline_mode<synchronous>, transform_indices = @transform_8, window_bounds = array<i64: 16, 1>}, {pipeline_mode = #tpu.pipeline_mode<synchronous>, transform_indices = @transform_9, window_bounds = array<i64: 8, 16>}, {pipeline_mode = #tpu.pipeline_mode<synchronous>, transform_indices = @transform_10, window_bounds = array<i64: 8, 1>}, {pipeline_mode = #tpu.pipeline_mode<synchronous>, transform_indices = @transform_11, window_bounds = array<i64: 8, 16>}, {pipeline_mode = #tpu.pipeline_mode<synchronous>, transform_indices = @transform_12, window_bounds = array<i64: 8, 1>}, {pipeline_mode = #tpu.pipeline_mode<synchronous>, transform_indices = @transform_13, window_bounds = array<i64: 16, 16>}, {pipeline_mode = #tpu.pipeline_mode<synchronous>, transform_indices = @transform_14, window_bounds = array<i64: 16, 1>}, {pipeline_mode = #tpu.pipeline_mode<synchronous>, transform_indices = @transform_15, window_bounds = array<i64: 16, 1>}, {pipeline_mode = #tpu.pipeline_mode<synchronous>, transform_indices = @transform_16, window_bounds = array<i64: 16, 1>}, {transform_indices = @transform_17, window_bounds = array<i64: 16, 256>}]} {
    %c0 = arith.constant 0 : index
    %c0_0 = arith.constant 0 : index
    %0 = vector.load %arg1[%c0, %c0_0] : memref<16x256xf32, #tpu.memory_space<vmem>>, vector<16x256xf32>
    %1 = tpu.iota {dimensions = array<i32: 1>} : vector<1x128xi32>
    %c64_i32 = arith.constant 64 : i32
    %2 = vector.broadcast %c64_i32 : i32 to vector<1x128xi32>
    %3 = arith.cmpi slt, %1, %2 : vector<1x128xi32>
    %cst = arith.constant 0.000000e+00 : f32
    %cst_1 = arith.constant -1.000000e+30 : f32
    %4 = vector.broadcast %cst : f32 to vector<1x128xf32>
    %5 = vector.broadcast %cst_1 : f32 to vector<1x128xf32>
    %6 = arith.select %3, %4, %5 : vector<1x128xi1>, vector<1x128xf32>
    %c0_2 = arith.constant 0 : index
    %c0_3 = arith.constant 0 : index
    %7 = vector.load %arg2[%c0_2, %c0_3] : memref<8x16xbf16, #tpu.memory_space<vmem>>, vector<8x16xbf16>
    %c0_4 = arith.constant 0 : index
    %c0_5 = arith.constant 0 : index
    %8 = vector.load %arg3[%c0_4, %c0_5] : memref<8x1xf32, #tpu.memory_space<vmem>>, vector<8x1xf32>
    %c0_6 = arith.constant 0 : index
    %c0_7 = arith.constant 0 : index
    %9 = vector.load %arg4[%c0_6, %c0_7] : memref<8x16xbf16, #tpu.memory_space<vmem>>, vector<8x16xbf16>
    %c0_8 = arith.constant 0 : index
    %c0_9 = arith.constant 0 : index
    %10 = vector.load %arg5[%c0_8, %c0_9] : memref<8x1xf32, #tpu.memory_space<vmem>>, vector<8x1xf32>
    %c0_10 = arith.constant 0 : index
    %c0_11 = arith.constant 0 : index
    %11 = vector.load %arg6[%c0_10, %c0_11] : memref<16x16xbf16, #tpu.memory_space<vmem>>, vector<16x16xbf16>
    %c0_12 = arith.constant 0 : index
    %c0_13 = arith.constant 0 : index
    %12 = vector.load %arg7[%c0_12, %c0_13] : memref<16x1xf32, #tpu.memory_space<vmem>>, vector<16x1xf32>
    %c0_14 = arith.constant 0 : index
    %c0_15 = arith.constant 0 : index
    %13 = vector.load %arg8[%c0_14, %c0_15] : memref<16x1xf32, #tpu.memory_space<vmem>>, vector<16x1xf32>
    %c0_16 = arith.constant 0 : index
    %c0_17 = arith.constant 0 : index
    %14 = vector.load %arg9[%c0_16, %c0_17] : memref<16x1xf32, #tpu.memory_space<vmem>>, vector<16x1xf32>
    %15 = arith.truncf %0 : vector<16x256xf32> to vector<16x256xbf16>
    %cst_18 = arith.constant dense<0.000000e+00> : vector<8x256xf32>
    %16 = tpu.matmul %7, %15, %cst_18 {dimension_numbers = #tpu.dot_dimension_numbers<[1], [0], [0], [1], [0, 0, 1, 1], [], []>} : vector<8x16xbf16>, vector<16x256xbf16>, vector<8x256xf32> -> vector<8x256xf32>
    %17 = vector.broadcast %8 : vector<8x1xf32> to vector<8x256xf32>
    %18 = arith.addf %16, %17 : vector<8x256xf32>
    %cst_19 = arith.constant dense<0.000000e+00> : vector<8x256xf32>
    %19 = tpu.matmul %9, %15, %cst_19 {dimension_numbers = #tpu.dot_dimension_numbers<[1], [0], [0], [1], [0, 0, 1, 1], [], []>} : vector<8x16xbf16>, vector<16x256xbf16>, vector<8x256xf32> -> vector<8x256xf32>
    %20 = vector.broadcast %10 : vector<8x1xf32> to vector<8x256xf32>
    %21 = arith.addf %19, %20 : vector<8x256xf32>
    %cst_20 = arith.constant dense<0.000000e+00> : vector<16x256xf32>
    %22 = tpu.matmul %11, %15, %cst_20 {dimension_numbers = #tpu.dot_dimension_numbers<[1], [0], [0], [1], [0, 0, 1, 1], [], []>} : vector<16x16xbf16>, vector<16x256xbf16>, vector<16x256xf32> -> vector<16x256xf32>
    %23 = vector.broadcast %12 : vector<16x1xf32> to vector<16x256xf32>
    %24 = arith.addf %22, %23 : vector<16x256xf32>
    %25 = arith.truncf %18 : vector<8x256xf32> to vector<8x256xbf16>
    %26 = arith.truncf %21 : vector<8x256xf32> to vector<8x256xbf16>
    %27 = arith.truncf %24 : vector<16x256xf32> to vector<16x256xbf16>
    %28 = vector.extract_strided_slice %25 {offsets = [0, 0], sizes = [8, 128], strides = [1, 1]} : vector<8x256xbf16> to vector<8x128xbf16>
    %29 = vector.extract_strided_slice %26 {offsets = [0, 0], sizes = [8, 128], strides = [1, 1]} : vector<8x256xbf16> to vector<8x128xbf16>
    %30 = vector.extract_strided_slice %27 {offsets = [0, 0], sizes = [16, 128], strides = [1, 1]} : vector<16x256xbf16> to vector<16x128xbf16>
    %cst_21 = arith.constant dense<0.000000e+00> : vector<128x128xf32>
    %31 = tpu.matmul %28, %29, %cst_21 {dimension_numbers = #tpu.dot_dimension_numbers<[0], [0], [1], [1], [0, 1, 1, 1], [], []>} : vector<8x128xbf16>, vector<8x128xbf16>, vector<128x128xf32> -> vector<128x128xf32>
    %32 = vector.broadcast %6 : vector<1x128xf32> to vector<128x128xf32>
    %33 = arith.addf %31, %32 : vector<128x128xf32>
    %cst_22 = arith.constant dense<0xFF800000> : vector<128xf32>
    %34 = vector.multi_reduction <maximumf>, %33, %cst_22 [1] : vector<128x128xf32> to vector<128xf32>
    %35 = vector.shape_cast %34 : vector<128xf32> to vector<128x1xf32>
    %36 = vector.broadcast %35 : vector<128x1xf32> to vector<128x128xf32>
    %37 = arith.subf %33, %36 : vector<128x128xf32>
    %38 = math.exp %37 : vector<128x128xf32>
    %cst_23 = arith.constant dense<0.000000e+00> : vector<128xf32>
    %39 = vector.multi_reduction <add>, %38, %cst_23 [1] : vector<128x128xf32> to vector<128xf32>
    %40 = vector.shape_cast %39 : vector<128xf32> to vector<128x1xf32>
    %41 = tpu.reciprocal %40 {approx = true} : vector<128x1xf32> -> vector<128x1xf32>
    %42 = vector.broadcast %41 : vector<128x1xf32> to vector<128x128xf32>
    %43 = arith.mulf %38, %42 : vector<128x128xf32>
    %44 = arith.truncf %43 : vector<128x128xf32> to vector<128x128xbf16>
    %cst_24 = arith.constant dense<0.000000e+00> : vector<16x128xf32>
    %45 = tpu.matmul %30, %44, %cst_24 {dimension_numbers = #tpu.dot_dimension_numbers<[1], [1], [0], [0], [0, 0, 1, 0], [], []>} : vector<16x128xbf16>, vector<128x128xbf16>, vector<16x128xf32> -> vector<16x128xf32>
    %46 = vector.extract_strided_slice %25 {offsets = [0, 128], sizes = [8, 128], strides = [1, 1]} : vector<8x256xbf16> to vector<8x128xbf16>
    %47 = vector.extract_strided_slice %26 {offsets = [0, 128], sizes = [8, 128], strides = [1, 1]} : vector<8x256xbf16> to vector<8x128xbf16>
    %48 = vector.extract_strided_slice %27 {offsets = [0, 128], sizes = [16, 128], strides = [1, 1]} : vector<16x256xbf16> to vector<16x128xbf16>
    %cst_25 = arith.constant dense<0.000000e+00> : vector<128x128xf32>
    %49 = tpu.matmul %46, %47, %cst_25 {dimension_numbers = #tpu.dot_dimension_numbers<[0], [0], [1], [1], [0, 1, 1, 1], [], []>} : vector<8x128xbf16>, vector<8x128xbf16>, vector<128x128xf32> -> vector<128x128xf32>
    %50 = vector.broadcast %6 : vector<1x128xf32> to vector<128x128xf32>
    %51 = arith.addf %49, %50 : vector<128x128xf32>
    %cst_26 = arith.constant dense<0xFF800000> : vector<128xf32>
    %52 = vector.multi_reduction <maximumf>, %51, %cst_26 [1] : vector<128x128xf32> to vector<128xf32>
    %53 = vector.shape_cast %52 : vector<128xf32> to vector<128x1xf32>
    %54 = vector.broadcast %53 : vector<128x1xf32> to vector<128x128xf32>
    %55 = arith.subf %51, %54 : vector<128x128xf32>
    %56 = math.exp %55 : vector<128x128xf32>
    %cst_27 = arith.constant dense<0.000000e+00> : vector<128xf32>
    %57 = vector.multi_reduction <add>, %56, %cst_27 [1] : vector<128x128xf32> to vector<128xf32>
    %58 = vector.shape_cast %57 : vector<128xf32> to vector<128x1xf32>
    %59 = tpu.reciprocal %58 {approx = true} : vector<128x1xf32> -> vector<128x1xf32>
    %60 = vector.broadcast %59 : vector<128x1xf32> to vector<128x128xf32>
    %61 = arith.mulf %56, %60 : vector<128x128xf32>
    %62 = arith.truncf %61 : vector<128x128xf32> to vector<128x128xbf16>
    %cst_28 = arith.constant dense<0.000000e+00> : vector<16x128xf32>
    %63 = tpu.matmul %48, %62, %cst_28 {dimension_numbers = #tpu.dot_dimension_numbers<[1], [1], [0], [0], [0, 0, 1, 0], [], []>} : vector<16x128xbf16>, vector<128x128xbf16>, vector<16x128xf32> -> vector<16x128xf32>
    %64 = tpu.concatenate %45, %63 in 1 : vector<16x128xf32>, vector<16x128xf32> -> vector<16x256xf32>
    %cst_29 = arith.constant 0.000000e+00 : f32
    %65 = vector.broadcast %cst_29 : f32 to vector<16x256xf32>
    %66 = arith.maximumf %64, %65 : vector<16x256xf32>
    %67 = vector.broadcast %13 : vector<16x1xf32> to vector<16x256xf32>
    %68 = arith.mulf %66, %67 : vector<16x256xf32>
    %69 = vector.broadcast %14 : vector<16x1xf32> to vector<16x256xf32>
    %70 = arith.addf %68, %69 : vector<16x256xf32>
    %c0_30 = arith.constant 0 : index
    %c0_31 = arith.constant 0 : index
    %71 = vector.load %arg10[%c0_30, %c0_31] : memref<8x16xbf16, #tpu.memory_space<vmem>>, vector<8x16xbf16>
    %c0_32 = arith.constant 0 : index
    %c0_33 = arith.constant 0 : index
    %72 = vector.load %arg11[%c0_32, %c0_33] : memref<8x1xf32, #tpu.memory_space<vmem>>, vector<8x1xf32>
    %c0_34 = arith.constant 0 : index
    %c0_35 = arith.constant 0 : index
    %73 = vector.load %arg12[%c0_34, %c0_35] : memref<8x16xbf16, #tpu.memory_space<vmem>>, vector<8x16xbf16>
    %c0_36 = arith.constant 0 : index
    %c0_37 = arith.constant 0 : index
    %74 = vector.load %arg13[%c0_36, %c0_37] : memref<8x1xf32, #tpu.memory_space<vmem>>, vector<8x1xf32>
    %c0_38 = arith.constant 0 : index
    %c0_39 = arith.constant 0 : index
    %75 = vector.load %arg14[%c0_38, %c0_39] : memref<16x16xbf16, #tpu.memory_space<vmem>>, vector<16x16xbf16>
    %c0_40 = arith.constant 0 : index
    %c0_41 = arith.constant 0 : index
    %76 = vector.load %arg15[%c0_40, %c0_41] : memref<16x1xf32, #tpu.memory_space<vmem>>, vector<16x1xf32>
    %c0_42 = arith.constant 0 : index
    %c0_43 = arith.constant 0 : index
    %77 = vector.load %arg16[%c0_42, %c0_43] : memref<16x1xf32, #tpu.memory_space<vmem>>, vector<16x1xf32>
    %c0_44 = arith.constant 0 : index
    %c0_45 = arith.constant 0 : index
    %78 = vector.load %arg17[%c0_44, %c0_45] : memref<16x1xf32, #tpu.memory_space<vmem>>, vector<16x1xf32>
    %79 = arith.truncf %70 : vector<16x256xf32> to vector<16x256xbf16>
    %cst_46 = arith.constant dense<0.000000e+00> : vector<8x256xf32>
    %80 = tpu.matmul %71, %79, %cst_46 {dimension_numbers = #tpu.dot_dimension_numbers<[1], [0], [0], [1], [0, 0, 1, 1], [], []>} : vector<8x16xbf16>, vector<16x256xbf16>, vector<8x256xf32> -> vector<8x256xf32>
    %81 = vector.broadcast %72 : vector<8x1xf32> to vector<8x256xf32>
    %82 = arith.addf %80, %81 : vector<8x256xf32>
    %cst_47 = arith.constant dense<0.000000e+00> : vector<8x256xf32>
    %83 = tpu.matmul %73, %79, %cst_47 {dimension_numbers = #tpu.dot_dimension_numbers<[1], [0], [0], [1], [0, 0, 1, 1], [], []>} : vector<8x16xbf16>, vector<16x256xbf16>, vector<8x256xf32> -> vector<8x256xf32>
    %84 = vector.broadcast %74 : vector<8x1xf32> to vector<8x256xf32>
    %85 = arith.addf %83, %84 : vector<8x256xf32>
    %cst_48 = arith.constant dense<0.000000e+00> : vector<16x256xf32>
    %86 = tpu.matmul %75, %79, %cst_48 {dimension_numbers = #tpu.dot_dimension_numbers<[1], [0], [0], [1], [0, 0, 1, 1], [], []>} : vector<16x16xbf16>, vector<16x256xbf16>, vector<16x256xf32> -> vector<16x256xf32>
    %87 = vector.broadcast %76 : vector<16x1xf32> to vector<16x256xf32>
    %88 = arith.addf %86, %87 : vector<16x256xf32>
    %89 = arith.truncf %82 : vector<8x256xf32> to vector<8x256xbf16>
    %90 = arith.truncf %85 : vector<8x256xf32> to vector<8x256xbf16>
    %91 = arith.truncf %88 : vector<16x256xf32> to vector<16x256xbf16>
    %92 = vector.extract_strided_slice %89 {offsets = [0, 0], sizes = [8, 128], strides = [1, 1]} : vector<8x256xbf16> to vector<8x128xbf16>
    %93 = vector.extract_strided_slice %90 {offsets = [0, 0], sizes = [8, 128], strides = [1, 1]} : vector<8x256xbf16> to vector<8x128xbf16>
    %94 = vector.extract_strided_slice %91 {offsets = [0, 0], sizes = [16, 128], strides = [1, 1]} : vector<16x256xbf16> to vector<16x128xbf16>
    %cst_49 = arith.constant dense<0.000000e+00> : vector<128x128xf32>
    %95 = tpu.matmul %92, %93, %cst_49 {dimension_numbers = #tpu.dot_dimension_numbers<[0], [0], [1], [1], [0, 1, 1, 1], [], []>} : vector<8x128xbf16>, vector<8x128xbf16>, vector<128x128xf32> -> vector<128x128xf32>
    %96 = vector.broadcast %6 : vector<1x128xf32> to vector<128x128xf32>
    %97 = arith.addf %95, %96 : vector<128x128xf32>
    %cst_50 = arith.constant dense<0xFF800000> : vector<128xf32>
    %98 = vector.multi_reduction <maximumf>, %97, %cst_50 [1] : vector<128x128xf32> to vector<128xf32>
    %99 = vector.shape_cast %98 : vector<128xf32> to vector<128x1xf32>
    %100 = vector.broadcast %99 : vector<128x1xf32> to vector<128x128xf32>
    %101 = arith.subf %97, %100 : vector<128x128xf32>
    %102 = math.exp %101 : vector<128x128xf32>
    %cst_51 = arith.constant dense<0.000000e+00> : vector<128xf32>
    %103 = vector.multi_reduction <add>, %102, %cst_51 [1] : vector<128x128xf32> to vector<128xf32>
    %104 = vector.shape_cast %103 : vector<128xf32> to vector<128x1xf32>
    %105 = tpu.reciprocal %104 {approx = true} : vector<128x1xf32> -> vector<128x1xf32>
    %106 = vector.broadcast %105 : vector<128x1xf32> to vector<128x128xf32>
    %107 = arith.mulf %102, %106 : vector<128x128xf32>
    %108 = arith.truncf %107 : vector<128x128xf32> to vector<128x128xbf16>
    %cst_52 = arith.constant dense<0.000000e+00> : vector<16x128xf32>
    %109 = tpu.matmul %94, %108, %cst_52 {dimension_numbers = #tpu.dot_dimension_numbers<[1], [1], [0], [0], [0, 0, 1, 0], [], []>} : vector<16x128xbf16>, vector<128x128xbf16>, vector<16x128xf32> -> vector<16x128xf32>
    %110 = vector.extract_strided_slice %89 {offsets = [0, 128], sizes = [8, 128], strides = [1, 1]} : vector<8x256xbf16> to vector<8x128xbf16>
    %111 = vector.extract_strided_slice %90 {offsets = [0, 128], sizes = [8, 128], strides = [1, 1]} : vector<8x256xbf16> to vector<8x128xbf16>
    %112 = vector.extract_strided_slice %91 {offsets = [0, 128], sizes = [16, 128], strides = [1, 1]} : vector<16x256xbf16> to vector<16x128xbf16>
    %cst_53 = arith.constant dense<0.000000e+00> : vector<128x128xf32>
    %113 = tpu.matmul %110, %111, %cst_53 {dimension_numbers = #tpu.dot_dimension_numbers<[0], [0], [1], [1], [0, 1, 1, 1], [], []>} : vector<8x128xbf16>, vector<8x128xbf16>, vector<128x128xf32> -> vector<128x128xf32>
    %114 = vector.broadcast %6 : vector<1x128xf32> to vector<128x128xf32>
    %115 = arith.addf %113, %114 : vector<128x128xf32>
    %cst_54 = arith.constant dense<0xFF800000> : vector<128xf32>
    %116 = vector.multi_reduction <maximumf>, %115, %cst_54 [1] : vector<128x128xf32> to vector<128xf32>
    %117 = vector.shape_cast %116 : vector<128xf32> to vector<128x1xf32>
    %118 = vector.broadcast %117 : vector<128x1xf32> to vector<128x128xf32>
    %119 = arith.subf %115, %118 : vector<128x128xf32>
    %120 = math.exp %119 : vector<128x128xf32>
    %cst_55 = arith.constant dense<0.000000e+00> : vector<128xf32>
    %121 = vector.multi_reduction <add>, %120, %cst_55 [1] : vector<128x128xf32> to vector<128xf32>
    %122 = vector.shape_cast %121 : vector<128xf32> to vector<128x1xf32>
    %123 = tpu.reciprocal %122 {approx = true} : vector<128x1xf32> -> vector<128x1xf32>
    %124 = vector.broadcast %123 : vector<128x1xf32> to vector<128x128xf32>
    %125 = arith.mulf %120, %124 : vector<128x128xf32>
    %126 = arith.truncf %125 : vector<128x128xf32> to vector<128x128xbf16>
    %cst_56 = arith.constant dense<0.000000e+00> : vector<16x128xf32>
    %127 = tpu.matmul %112, %126, %cst_56 {dimension_numbers = #tpu.dot_dimension_numbers<[1], [1], [0], [0], [0, 0, 1, 0], [], []>} : vector<16x128xbf16>, vector<128x128xbf16>, vector<16x128xf32> -> vector<16x128xf32>
    %128 = tpu.concatenate %109, %127 in 1 : vector<16x128xf32>, vector<16x128xf32> -> vector<16x256xf32>
    %cst_57 = arith.constant 0.000000e+00 : f32
    %129 = vector.broadcast %cst_57 : f32 to vector<16x256xf32>
    %130 = arith.maximumf %128, %129 : vector<16x256xf32>
    %131 = vector.broadcast %77 : vector<16x1xf32> to vector<16x256xf32>
    %132 = arith.mulf %130, %131 : vector<16x256xf32>
    %133 = vector.broadcast %78 : vector<16x1xf32> to vector<16x256xf32>
    %134 = arith.addf %132, %133 : vector<16x256xf32>
    %135 = arith.addf %134, %0 : vector<16x256xf32>
    %cst_58 = arith.constant 0.000000e+00 : f32
    %136 = vector.broadcast %cst_58 : f32 to vector<16x256xf32>
    %137 = arith.maximumf %135, %136 : vector<16x256xf32>
    %c0_59 = arith.constant 0 : index
    %c0_60 = arith.constant 0 : index
    %138 = vector.load %arg18[%c0_59, %c0_60] : memref<16x256xf32, #tpu.memory_space<vmem>>, vector<16x256xf32>
    tpu.vector_store %arg18[%c0_59, %c0_60], %137 {strides = array<i32>} : memref<16x256xf32, #tpu.memory_space<vmem>>, vector<16x256xf32>,
    return
  }
  func.func @transform_0(%arg0: i32) -> (i32, i32) {
    %c0_i32 = arith.constant 0 : i32
    %c0_i32_0 = arith.constant 0 : i32
    return %c0_i32, %arg0 : i32, i32
  }
  func.func @transform_1(%arg0: i32) -> (i32, i32) {
    %c0_i32 = arith.constant 0 : i32
    %c0_i32_0 = arith.constant 0 : i32
    %c0_i32_1 = arith.constant 0 : i32
    return %c0_i32, %c0_i32_0 : i32, i32
  }
  func.func @transform_2(%arg0: i32) -> (i32, i32) {
    %c0_i32 = arith.constant 0 : i32
    %c0_i32_0 = arith.constant 0 : i32
    %c0_i32_1 = arith.constant 0 : i32
    return %c0_i32, %c0_i32_0 : i32, i32
  }
  func.func @transform_3(%arg0: i32) -> (i32, i32) {
    %c0_i32 = arith.constant 0 : i32
    %c0_i32_0 = arith.constant 0 : i32
    %c0_i32_1 = arith.constant 0 : i32
    return %c0_i32, %c0_i32_0 : i32, i32
  }
  func.func @transform_4(%arg0: i32) -> (i32, i32) {
    %c0_i32 = arith.constant 0 : i32
    %c0_i32_0 = arith.constant 0 : i32
    %c0_i32_1 = arith.constant 0 : i32
    return %c0_i32, %c0_i32_0 : i32, i32
  }
  func.func @transform_5(%arg0: i32) -> (i32, i32) {
    %c0_i32 = arith.constant 0 : i32
    %c0_i32_0 = arith.constant 0 : i32
    %c0_i32_1 = arith.constant 0 : i32
    return %c0_i32, %c0_i32_0 : i32, i32
  }
  func.func @transform_6(%arg0: i32) -> (i32, i32) {
    %c0_i32 = arith.constant 0 : i32
    %c0_i32_0 = arith.constant 0 : i32
    %c0_i32_1 = arith.constant 0 : i32
    return %c0_i32, %c0_i32_0 : i32, i32
  }
  func.func @transform_7(%arg0: i32) -> (i32, i32) {
    %c0_i32 = arith.constant 0 : i32
    %c0_i32_0 = arith.constant 0 : i32
    %c0_i32_1 = arith.constant 0 : i32
    return %c0_i32, %c0_i32_0 : i32, i32
  }
  func.func @transform_8(%arg0: i32) -> (i32, i32) {
    %c0_i32 = arith.constant 0 : i32
    %c0_i32_0 = arith.constant 0 : i32
    %c0_i32_1 = arith.constant 0 : i32
    return %c0_i32, %c0_i32_0 : i32, i32
  }
  func.func @transform_9(%arg0: i32) -> (i32, i32) {
    %c0_i32 = arith.constant 0 : i32
    %c0_i32_0 = arith.constant 0 : i32
    %c0_i32_1 = arith.constant 0 : i32
    return %c0_i32, %c0_i32_0 : i32, i32
  }
  func.func @transform_10(%arg0: i32) -> (i32, i32) {
    %c0_i32 = arith.constant 0 : i32
    %c0_i32_0 = arith.constant 0 : i32
    %c0_i32_1 = arith.constant 0 : i32
    return %c0_i32, %c0_i32_0 : i32, i32
  }
  func.func @transform_11(%arg0: i32) -> (i32, i32) {
    %c0_i32 = arith.constant 0 : i32
    %c0_i32_0 = arith.constant 0 : i32
    %c0_i32_1 = arith.constant 0 : i32
    return %c0_i32, %c0_i32_0 : i32, i32
  }
  func.func @transform_12(%arg0: i32) -> (i32, i32) {
    %c0_i32 = arith.constant 0 : i32
    %c0_i32_0 = arith.constant 0 : i32
    %c0_i32_1 = arith.constant 0 : i32
    return %c0_i32, %c0_i32_0 : i32, i32
  }
  func.func @transform_13(%arg0: i32) -> (i32, i32) {
    %c0_i32 = arith.constant 0 : i32
    %c0_i32_0 = arith.constant 0 : i32
    %c0_i32_1 = arith.constant 0 : i32
    return %c0_i32, %c0_i32_0 : i32, i32
  }
  func.func @transform_14(%arg0: i32) -> (i32, i32) {
    %c0_i32 = arith.constant 0 : i32
    %c0_i32_0 = arith.constant 0 : i32
    %c0_i32_1 = arith.constant 0 : i32
    return %c0_i32, %c0_i32_0 : i32, i32
  }
  func.func @transform_15(%arg0: i32) -> (i32, i32) {
    %c0_i32 = arith.constant 0 : i32
    %c0_i32_0 = arith.constant 0 : i32
    %c0_i32_1 = arith.constant 0 : i32
    return %c0_i32, %c0_i32_0 : i32, i32
  }
  func.func @transform_16(%arg0: i32) -> (i32, i32) {
    %c0_i32 = arith.constant 0 : i32
    %c0_i32_0 = arith.constant 0 : i32
    %c0_i32_1 = arith.constant 0 : i32
    return %c0_i32, %c0_i32_0 : i32, i32
  }
  func.func @transform_17(%arg0: i32) -> (i32, i32) {
    %c0_i32 = arith.constant 0 : i32
    %c0_i32_0 = arith.constant 0 : i32
    return %c0_i32, %arg0 : i32, i32
  }
}

</mosaic_0001>

<bundles_post_ra>
// kernel: sares_forward.1
= control target key start
LH: loop header
LB: loop body
LE: loop exit
PB: predicated region body
PF: predicated region fallthrough
CT: control target
= control target key end

     0   :  { %s3999_s0 = inlined_call_operand.vmem [shape: f32[16,512], index: 0, kind: input, shape index: {}]   ;;  %s4000_s1 = inlined_call_operand.vmem [shape: bf16[8,16], index: 1, kind: input, shape index: {}]   ;;  %s4001_s2 = inlined_call_operand.vmem [shape: f32[8,1], index: 2, kind: input, shape index: {}]   ;;  %s4002_s3 = inlined_call_operand.vmem [shape: bf16[8,16], index: 3, kind: input, shape index: {}]   ;;  %s4003_s4 = inlined_call_operand.vmem [shape: f32[8,1], index: 4, kind: input, shape index: {}]   ;;  %s4004_s5 = inlined_call_operand.vmem [shape: bf16[16,16], index: 5, kind: input, shape index: {}]   ;;  %s4005_s6 = inlined_call_operand.vmem [shape: f32[16,1], index: 6, kind: input, shape index: {}]   ;;  %s4006_s7 = inlined_call_operand.vmem [shape: f32[16,1], index: 7, kind: input, shape index: {}]   ;;  %s4007_s8 = inlined_call_operand.vmem [shape: f32[16,1], index: 8, kind: input, shape index: {}]   ;;  %s4008_s9 = inlined_call_operand.vmem [shape: bf16[8,16], index: 9, kind: input, shape index: {}]   ;;  %s4009_s10 = inlined_call_operand.vmem [shape: f32[8,1], index: 10, kind: input, shape index: {}]   ;;  %s4010_s11 = inlined_call_operand.vmem [shape: bf16[8,16], index: 11, kind: input, shape index: {}]   ;;  %s4011_s12 = inlined_call_operand.vmem [shape: f32[8,1], index: 12, kind: input, shape index: {}]   ;;  %s4012_s13 = inlined_call_operand.vmem [shape: bf16[16,16], index: 13, kind: input, shape index: {}]   ;;  %s4013_s14 = inlined_call_operand.vmem [shape: f32[16,1], index: 14, kind: input, shape index: {}]   ;;  %s4014_s15 = inlined_call_operand.vmem [shape: f32[16,1], index: 15, kind: input, shape index: {}]   ;;  %s4015_s16 = inlined_call_operand.vmem [shape: f32[16,1], index: 16, kind: input, shape index: {}]   ;;  %s4016_s17 = inlined_call_operand.vmem [shape: f32[16,512], index: 17, kind: output, shape index: {}]  }
   0x1   :  { %4018 = sst [smem:[#allocation4_spill]] %s3999_s0 }
   0x2   :  { %4019 = sst [smem:[#allocation5_spill]] %s4000_s1 }
   0x3   :  { %4020 = sst [smem:[#allocation6_spill]] %s4001_s2 }
   0x4   :  { %4021 = sst [smem:[#allocation7_spill]] %s4002_s3 }
   0x5   :  { %s3133_s24 = smov 0   ;;  %s3135_s25 = smov 0  }
   0x6   :  { %s3137_s26 = smov 0  }
   0x7 LB: > { %s4017_s27 = sadd.s32 4294967295, %s3037_s26   ;;  %s3150_s28 = sadd.s32 1, %s3037_s26   ;;  %s3037_s26 = sphi %s3137_s26, %s4030_s26   ;;  %s3033_s25 = sphi %s3135_s25, %s4029_s25   ;;  %s3029_s24 = sphi %s3133_s24, %s4028_s24  }
   0x8   : > { %s31_s29 = ssub.s32 %s3037_s26, %s3150_s28  ;;  %s34_s0 = sadd.s32 1, %s3033_s25 }
   0x9   : > { %p32_p0 = scmp.eq.s32.totalorder %s31_s29, 0  ;;  %p41_p1 = scmp.ne.s32.totalorder %s3033_s25, %s3029_s24 }
   0xa   : > { %p42_p2 = scmp.eq.s32.totalorder %s3037_s26, 0  ;;  %p407_p3 = scmp.eq.s32.totalorder %s4017_s27, 1 }
   0xb   : > { %s3161_s30 = scalar_select %p32_p0, %s3033_s25, %s34_s0  }
   0xc   : > { %p43_p4 = por %p42_p2, %p41_p1  ;;  %p3163_p5 = por %p407_p3, %p41_p1 }
   0xd   : > { %p2441_p6 = scmp.ge.s32.totalorder %s3037_s26, 2 }
   0xf   : > { %477 = sbr.rel (%p2441_p6) target bundleno = 34 (0x22), region = 80 }
  0x16   : > { %480 = sbr.rel (!%p43_p4) target bundleno = 34 (0x22), region = 84  ;;  %s482_s19 = sand.u32 (%p43_p4), 1, %s3033_s25  }
  0x17   : > { %s2493_s1 = sshll.u32 (%p43_p4), %s3037_s26, 4  ;;  %s2442_s20 = sshll.u32 (%p43_p4), %s482_s19, 5 }
  0x18   : > { %s4023_s23 = sld [smem:[#allocation4_spill]] (%p43_p4)  ;;  %s484_s0 = scalar_lea.vmem (%p43_p4), [#allocation2], %s2442_s20 }
  0x1e   : > { %s487_s29 = scalar_lea.vmem %s4023_s23, %s2493_s1 }
  0x1f   : > { %v500_v0 = vld [vmem:[%s487_s29] sm:$0xff]  ;;  %v502_v1 = vld [vmem:[%s487_s29 + $0x8] sm:$0xff] }
  0x20   : > { %v504_v2 = vld [vmem:[%s487_s29 + $0x20] sm:$0xff]  ;;  %501 = vst [vmem:[%s484_s0] sm:$0xff] %v500_v0  ;;  %503 = vst [vmem:[%s484_s0 + $0x8] sm:$0xff] %v502_v1  ;;  %v506_v3 = vld [vmem:[%s487_s29 + $0x28] sm:$0xff] }
  0x21   : > { %505 = vst [vmem:[%s484_s0 + $0x10] sm:$0xff] %v504_v2  ;;  %507 = vst [vmem:[%s484_s0 + $0x18] sm:$0xff] %v506_v3 }
  0x22 PF: > { %p2445_p7 = scmp.ge.s32.totalorder %s3037_s26, 1  ;;  %p512_p8 = scmp.lt.s32.totalorder %s3037_s26, 3 }
  0x24   : > { %p513_p9 = pnand %p2445_p7, %p512_p8 }
  0x25   : > { %s519_s19 = sand.u32 (!%p513_p9), 1, %s3029_s24   ;;  %s4024_s2 = sld [smem:[#allocation6_spill]] (!%p513_p9)  ;;  %v3039_v5 = vmov (!%p513_p9), 0   ;;  %v583_v12 = vld [vmem:[%s4003_s4] sm:$0xff] (!%p513_p9)  ;;  %vm599_vm0 = vcmask (!%p513_p9), 130048   ;;  %vm801_vm1 = vcmask (!%p513_p9), 1043456   ;;  %v576_v63 = vlaneseq (!%p513_p9) }
  0x26   : > { %516 = sbr.rel (%p513_p9) target bundleno = 2423 (0x977), region = 107  ;;  %s3179_s20 = sshll.u32 (!%p513_p9), %s519_s19, 5  ;;  %635 = vmatprep.mubr.bf16.mxu0 (!%p513_p9), %v3039_v5  ;;  %684 = vmatprep.mubr.bf16.mxu1 (!%p513_p9), %v3039_v5  ;;  %vm776_vm2 = vcmask (!%p513_p9), 64512   ;;  %vm3042_vm4 = vmmov (!%p513_p9), 0  }
  0x27   : > { %2751 = vset.pattern.permute.xlu0 (!%p513_p9), %v3039_v5  ;;  %s3185_s22 = scalar_lea.vmem (!%p513_p9), [#allocation2], %s3179_s20  ;;  %s4025_s19 = sld [smem:[#allocation5_spill]] (!%p513_p9)  ;;  %v577_v2 = vand.u32 (!%p513_p9), 127, %v576_v63 }
  0x28   : > { %v573_v6 = vld [vmem:[%s3185_s22 + $0x8] sm:$0xff] (!%p513_p9)  ;;  %v575_v7 = vld [vmem:[%s3185_s22 + $0x18] sm:$0xff] (!%p513_p9)  ;;  %v572_v8 = vld [vmem:[%s3185_s22] sm:$0xff] (!%p513_p9)  ;;  %s4026_s3 = sld [smem:[#allocation7_spill]] (!%p513_p9) }
  0x29   : > { %v593_v9 = vpack.c.bf16 (!%p513_p9), %v575_v7, %v573_v6  ;;  %v574_v10 = vld [vmem:[%s3185_s22 + $0x10] sm:$0xff] (!%p513_p9)  ;;  %vm578_vm3 = vcmp.lt.s32.totalorder (!%p513_p9), %v577_v2, 64  ;;  %v3040_v7 = vmov (!%p513_p9), -1e+30  }
  0x2a   : > { %v592_v11 = vpack.c.bf16 (!%p513_p9), %v574_v10, %v572_v8  ;;  %v3238_v8 = vsel (!%p513_p9), %vm578_vm3, 0.0, %v3040_v7 }
  0x2b   : > { %v581_v4 = vld [vmem:[%s4024_s2] sm:$0xff] (!%p513_p9)  ;;  %603 = vmatprep.subr.bf16.mxu0 (!%p513_p9), %v593_v9  ;;  %652 = vmatprep.subr.bf16.mxu1 (!%p513_p9), %v593_v9  ;;  %s568_s2 = scalar_lea.vmem (!%p513_p9), [#allocation3], %s3179_s20 }
  0x2c   : > { %596 = vperm.xlu0 (!%p513_p9), %2751, %v581_v4   ;;  %604 = vmatpush1.bf16.msra.mxu0 (!%p513_p9), %v592_v11 }
  0x2d   : > { %653 = vmatpush1.bf16.msra.mxu1 %v592_v11  ;;  %v580_v13 = vld [vmem:[%s4025_s19] sm:$0xf]  ;;  %711 = vmatprep.subr.bf16.mxu0 %v593_v9 }
  0x2e   : > { %v582_v14 = vld [vmem:[%s4026_s3] sm:$0xf]  ;;  %s4027_s3 = sadd.s32 (%p3163_p5), 4294967295, %s3037_s26  }
  0x2f   : > { %2448 = vmatmul.mubr.msk.bf16.vlgmr.msra.gmra.mrb[0].mxu0 %vm599_vm0, %v580_v13  ;;  %s2494_s20 = sshll.u32 (%p3163_p5), %s4027_s3, 4 }
  0x30   : > { %646 = vperm.xlu0 %2751, %v583_v12   ;;  %2449 = vmatmul.mubr.msk.bf16.vlgmr.msra.gmra.mrb[0].mxu1 %vm599_vm0, %v582_v14  ;;  %s2358_s19 = scalar_lea.vmem (%p3163_p5), %s4016_s17, %s2494_s20 }
  0x31   : > { %712 = vmatpush1.bf16.msra.mxu0 %v592_v11  ;;  %743 = vmatprep.mubr.bf16.mxu0 %v3039_v5 }
  0xab   : > { %v597_v15 = vpop.permute.xlu0 %596 }
  0xaf   : > { %v647_v16 = vpop.permute.xlu0 %646 }
 0x102   : > { %v637_v17 = vpop.f32.mrb[0].mxu0 }
 0x103   : > { %v686_v18 = vpop.f32.mrb[0].mxu1  ;;  %v639_v20 = vpop.f32.mrb[1].mxu0  ;;  %v638_v22 = vadd.f32 %v637_v17, %v597_v15 }
 0x104   : > { %v687_v19 = vadd.f32 %v686_v18, %v647_v16  ;;  %v688_v21 = vpop.f32.mrb[1].mxu1  ;;  %v641_v24 = vpop.f32.mrb[2].mxu0  ;;  %v640_v32 = vadd.f32 %v639_v20, %v597_v15 }
 0x105   : > { %v689_v23 = vadd.f32 %v688_v21, %v647_v16  ;;  %v690_v25 = vpop.f32.mrb[2].mxu1  ;;  %v642_v27 = vpop.f32.mrb[3].mxu0  ;;  %v754_v28 = vpack.c.bf16 %v638_v22, %v638_v22 }
 0x106   : > { %v756_v26 = vpack.c.bf16 %v687_v19, %v687_v19  ;;  %v691_v29 = vpop.f32.mrb[3].mxu1  ;;  %v755_v33 = vpack.c.bf16 %v640_v32, %v640_v32 }
 0x107   : > { %v757_v30 = vpack.c.bf16 %v689_v23, %v689_v23  ;;  %760 = vxpose.xlu1.c.b16.start.end [1/1] (short) %v754_v28, 128 }
 0x108   : > { %v803_v31 = vsel %vm801_vm1, %v756_v26, 0  ;;  %2719 = vmatprep.subr.msk.bf16.mxu1 %vm801_vm1, %v756_v26 }
 0x109   : > { %2568 = vmatpush3.bf16.msra.mxu1 %v803_v31  ;;  %v1136_v36 = vsel %vm801_vm1, %v757_v30, 0 }
 0x10a   : > { %2720 = vmatprep.subr.msk.bf16.mxu1 %vm801_vm1, %v757_v30 }
 0x124   : > { %1095 = vxpose.xlu1.c.b16.start.end [1/1] (short) %v755_v33, 128 }
 0x128   : > { %2752 = vset.pattern.permute.xlu1 %v3039_v5 }
 0x16d   : > { %v768_v34 = vpop.trf.xlu1 }
 0x16e   : > { %2569 = vmatprep.mubr.msk.bf16.mxu1 %vm776_vm2, %v768_v34 }
 0x171   : > { %v769_v35 = vpop.trf.xlu1 }
 0x172   : > { %2570 = vmatmul.mubr.msk.bf16.vlgmr.msra.gmra.mrb[4].mxu1 %vm776_vm2, %v769_v35 }
 0x173   : > { %2606 = vmatpush3.bf16.msra.mxu1 %v1136_v36 }
 0x175   : > { %v770_v37 = vpop.trf.xlu1 }
 0x176   : > { %2573 = vmatprep.mubr.msk.bf16.mxu1 %vm776_vm2, %v770_v37 }
 0x179   : > { %v771_v38 = vpop.trf.xlu1 }
 0x17a   : > { %2574 = vmatmul.mubr.msk.bf16.gmra.mrb[8].mxu1 %vm776_vm2, %v771_v38 }
 0x17d   : > { %v772_v39 = vpop.trf.xlu1 }
 0x17e   : > { %2577 = vmatprep.mubr.msk.bf16.mxu1 %vm776_vm2, %v772_v39 }
 0x181   : > { %v773_v40 = vpop.trf.xlu1 }
 0x182   : > { %2578 = vmatmul.mubr.msk.bf16.gmra.mrb[12].mxu1 %vm776_vm2, %v773_v40 }
 0x185   : > { %v774_v41 = vpop.trf.xlu1 }
 0x186   : > { %2581 = vmatprep.mubr.msk.bf16.mxu1 %vm776_vm2, %v774_v41 }
 0x189   : > { %v775_v42 = vpop.trf.xlu1 }
 0x18a   : > { %2582 = vmatmul.mubr.msk.bf16.gmra.mrb[16].mxu1 %vm776_vm2, %v775_v42 }
 0x18d   : > { %v1103_v43 = vpop.trf.xlu1 }
 0x18e   : > { %2607 = vmatprep.mubr.msk.bf16.mxu1 %vm776_vm2, %v1103_v43 }
 0x191   : > { %v1104_v44 = vpop.trf.xlu1 }
 0x192   : > { %2608 = vmatmul.mubr.msk.bf16.vlgmr.msra.gmra.mrb[20].mxu1 %vm776_vm2, %v1104_v44 }
 0x195   : > { %v1105_v45 = vpop.trf.xlu1 }
 0x196   : > { %2611 = vmatprep.mubr.msk.bf16.mxu1 %vm776_vm2, %v1105_v45 }
 0x199   : > { %v1106_v46 = vpop.trf.xlu1 }
 0x19a   : > { %2612 = vmatmul.mubr.msk.bf16.gmra.mrb[24].mxu1 %vm776_vm2, %v1106_v46 }
 0x19d   : > { %v1107_v47 = vpop.trf.xlu1 }
 0x19e   : > { %2615 = vmatprep.mubr.msk.bf16.mxu1 %vm776_vm2, %v1107_v47  ;;  %v2753_v47 = vld [vmem:[%s4004_s5] sm:$0xff]  }
 0x19f   : > { %2451 = vmatmul.mubr.msk.bf16.vlgmr.msra.gmra.mrb[4].mxu0 %vm599_vm0, %v2753_v47 }
 0x1a1   : > { %v1108_v48 = vpop.trf.xlu1 }
 0x1a2   : > { %2616 = vmatmul.mubr.msk.bf16.gmra.mrb[28].mxu1 %vm776_vm2, %v1108_v48 }
 0x1a5   : > { %v1109_v49 = vpop.trf.xlu1 }
 0x1a6   : > { %2619 = vmatprep.mubr.msk.bf16.mxu1 %vm776_vm2, %v1109_v49 }
 0x1a9   : > { %v1110_v50 = vpop.trf.xlu1 }
 0x1aa   : > { %2620 = vmatmul.mubr.msk.bf16.gmra.mrb[32].mxu1 %vm776_vm2, %v1110_v50 }
 0x245   : > { %v2571_v51 = vpop.f32.mrb[4].mxu1 }
 0x246   : > { %v839_v52 = vpop.f32.mrb[5].mxu1  ;;  %v3280_v30 = vadd.f32 %v2571_v51, %v3238_v8 }
 0x247   : > { %v2572_v53 = vpop.f32.mrb[6].mxu1  ;;  %v3248_v14 = vadd.f32 %v839_v52, %v3238_v8 }
 0x248   : > { %v842_v54 = vpop.f32.mrb[7].mxu1  ;;  %v3288_v34 = vadd.f32 %v2572_v53, %v3238_v8 }
 0x249   : > { %v3256_v18 = vadd.f32 %v842_v54, %v3238_v8 }
 0x24d   : > { %v3224_v55 = vpop.f32.mrb[8].mxu1 }
 0x24e   : > { %v3226_v56 = vpop.f32.mrb[9].mxu1  ;;  %v3330_v46 = vadd.f32 %v3224_v55, %v3238_v8 }
 0x24f   : > { %v2576_v57 = vpop.f32.mrb[10].mxu1  ;;  %v3313_v42 = vadd.f32 %v3226_v56, %v3238_v8 }
 0x250   : > { %v858_v58 = vpop.f32.mrb[11].mxu1  ;;  %v3268_v23 = vadd.f32 %v2576_v57, %v3238_v8 }
 0x251   : > { %v3252_v15 = vadd.f32 %v858_v58, %v3238_v8 }
 0x255   : > { %v3228_v59 = vpop.f32.mrb[12].mxu1 }
 0x256   : > { %v3230_v60 = vpop.f32.mrb[13].mxu1  ;;  %v3358_v52 = vadd.f32 %v3228_v59, %v3238_v8 }
 0x257   : > { %v2580_v61 = vpop.f32.mrb[14].mxu1  ;;  %v3349_v50 = vadd.f32 %v3230_v60, %v3238_v8 }
 0x258   : > { %v874_v62 = vpop.f32.mrb[15].mxu1  ;;  %v3300_v39 = vadd.f32 %v2580_v61, %v3238_v8 }
 0x259   : > { %v3284_v31 = vadd.f32 %v874_v62, %v3238_v8 }
 0x25d   : > { %v3232_v0 = vpop.f32.mrb[16].mxu1 }
 0x25e   : > { %v3234_v1 = vpop.f32.mrb[17].mxu1  ;;  %v3376_v56 = vadd.f32 %v3232_v0, %v3238_v8 }
 0x25f   : > { %v3236_v3 = vpop.f32.mrb[18].mxu1  ;;  %v3367_v54 = vadd.f32 %v3234_v1, %v3238_v8 }
 0x260   : > { %v890_v4 = vpop.f32.mrb[19].mxu1  ;;  %v3338_v48 = vadd.f32 %v3236_v3, %v3238_v8 }
 0x261   : > { %v3317_v43 = vadd.f32 %v890_v4, %v3238_v8 }
 0x265   : > { %v2609_v6 = vpop.f32.mrb[20].mxu1 }
 0x266   : > { %v1172_v9 = vpop.f32.mrb[21].mxu1  ;;  %v3264_v22 = vadd.f32 %v2609_v6, %v3238_v8 }
 0x267   : > { %v3241_v10 = vadd.f32 %v1172_v9, %v3238_v8  ;;  %v2610_v11 = vpop.f32.mrb[22].mxu1 }
 0x268   : > { %v1175_v12 = vpop.f32.mrb[23].mxu1  ;;  %v3272_v26 = vadd.f32 %v2610_v11, %v3238_v8 }
 0x269   : > { %v3244_v13 = vadd.f32 %v1175_v12, %v3238_v8  ;;  %1235 = vmax.xlane.f32.xlu0 %v3241_v10 }
 0x26b   : > { %1237 = vmax.xlane.f32.xlu1 %v3244_v13 }
 0x26d   : > { %902 = vmax.xlane.f32.xlu0 %v3248_v14  ;;  %v2613_v16 = vpop.f32.mrb[24].mxu1 }
 0x26e   : > { %v1188_v17 = vpop.f32.mrb[25].mxu1  ;;  %v3321_v44 = vadd.f32 %v2613_v16, %v3238_v8 }
 0x26f   : > { %912 = vmax.xlane.f32.xlu1 %v3252_v15  ;;  %v2614_v19 = vpop.f32.mrb[26].mxu1  ;;  %v3295_v38 = vadd.f32 %v1188_v17, %v3238_v8 }
 0x270   : > { %v3260_v20 = vadd.f32 %v2614_v19, %v3238_v8  ;;  %v1191_v21 = vpop.f32.mrb[27].mxu1 }
 0x271   : > { %904 = vmax.xlane.f32.xlu0 %v3256_v18  ;;  %v3303_v40 = vadd.f32 %v1191_v21, %v3238_v8 }
 0x273   : > { %1249 = vmax.xlane.f32.xlu1 %v3260_v20 }
 0x275   : > { %1239 = vmax.xlane.f32.xlu0 %v3264_v22  ;;  %v2617_v24 = vpop.f32.mrb[28].mxu1 }
 0x276   : > { %v1204_v25 = vpop.f32.mrb[29].mxu1  ;;  %v3353_v51 = vadd.f32 %v2617_v24, %v3238_v8 }
 0x277   : > { %916 = vmax.xlane.f32.xlu1 %v3268_v23  ;;  %v2618_v27 = vpop.f32.mrb[30].mxu1  ;;  %v3343_v49 = vadd.f32 %v1204_v25, %v3238_v8 }
 0x278   : > { %v1207_v28 = vpop.f32.mrb[31].mxu1  ;;  %v3291_v35 = vadd.f32 %v2618_v27, %v3238_v8 }
 0x279   : > { %v3276_v29 = vadd.f32 %v1207_v28, %v3238_v8  ;;  %1241 = vmax.xlane.f32.xlu0 %v3272_v26 }
 0x27b   : > { %1253 = vmax.xlane.f32.xlu1 %v3276_v29 }
 0x27d   : > { %906 = vmax.xlane.f32.xlu0 %v3280_v30  ;;  %v2621_v32 = vpop.f32.mrb[32].mxu1 }
 0x27e   : > { %v1220_v33 = vpop.f32.mrb[33].mxu1  ;;  %v3371_v55 = vadd.f32 %v2621_v32, %v3238_v8 }
 0x27f   : > { %920 = vmax.xlane.f32.xlu1 %v3284_v31  ;;  %v2622_v36 = vpop.f32.mrb[34].mxu1  ;;  %v3362_v53 = vadd.f32 %v1220_v33, %v3238_v8 }
 0x280   : > { %v1223_v37 = vpop.f32.mrb[35].mxu1  ;;  %v3324_v45 = vadd.f32 %v2622_v36, %v3238_v8 }
 0x281   : > { %908 = vmax.xlane.f32.xlu0 %v3288_v34  ;;  %v3308_v41 = vadd.f32 %v1223_v37, %v3238_v8 }
 0x283   : > { %1257 = vmax.xlane.f32.xlu1 %v3291_v35 }
 0x285   : > { %1243 = vmax.xlane.f32.xlu0 %v3295_v38 }
 0x287   : > { %924 = vmax.xlane.f32.xlu1 %v3300_v39 }
 0x289   : > { %1245 = vmax.xlane.f32.xlu0 %v3303_v40 }
 0x28b   : > { %1261 = vmax.xlane.f32.xlu1 %v3308_v41 }
 0x28d   : > { %910 = vmax.xlane.f32.xlu0 %v3313_v42 }
 0x28f   : > { %928 = vmax.xlane.f32.xlu1 %v3317_v43 }
 0x291   : > { %1247 = vmax.xlane.f32.xlu0 %v3321_v44 }
 0x293   : > { %1265 = vmax.xlane.f32.xlu1 %v3324_v45 }
 0x295   : > { %914 = vmax.xlane.f32.xlu0 %v3330_v46 }
 0x297   : > { %932 = vmax.xlane.f32.xlu1 %v3338_v48 }
 0x299   : > { %1251 = vmax.xlane.f32.xlu0 %v3343_v49 }
 0x29d   : > { %918 = vmax.xlane.f32.xlu0 %v3349_v50 }
 0x2a1   : > { %1255 = vmax.xlane.f32.xlu0 %v3353_v51 }
 0x2a5   : > { %922 = vmax.xlane.f32.xlu0 %v3358_v52 }
 0x2a9   : > { %1259 = vmax.xlane.f32.xlu0 %v3362_v53 }
 0x2ad   : > { %926 = vmax.xlane.f32.xlu0 %v3367_v54 }
 0x2b1   : > { %1263 = vmax.xlane.f32.xlu0 %v3371_v55 }
 0x2b5   : > { %930 = vmax.xlane.f32.xlu0 %v3376_v56 }
 0x2f6   : > { %v1236_v57 = vpop.xlane.xlu0 %1235 }
 0x2f7   : > { %v1267_v6 = vsub.f32 %v3241_v10, %v1236_v57 }
 0x2f8   : > { %v1238_v58 = vpop.xlane.xlu1 %1237 }
 0x2f9   : > { %v1283_v11 = vmul.f32 1.442695, %v1267_v6 }
 0x2fa   : > { %v903_v59 = vpop.xlane.xlu0 %902 }
 0x2fb   : > { %v934_v60 = vsub.f32 %v3248_v14, %v903_v59 }
 0x2fc   : > { %v913_v61 = vpop.xlane.xlu1 %912 }
 0x2fd   : > { %v950_v62 = vmul.f32 1.442695, %v934_v60  ;;  %v939_v37 = vsub.f32 %v3252_v15, %v913_v61 }
 0x2fe   : > { %v905_v63 = vpop.xlane.xlu0 %904 }
 0x2ff   : > { %2755 = vpow2.f32 %v950_v62  ;;  %v935_v1 = vsub.f32 %v3256_v18, %v905_v63  ;;  %v960_v59 = vmul.f32 1.442695, %v939_v37 }
 0x300   : > { %v1250_v3 = vpop.xlane.xlu1 %1249 }
 0x301   : > { %v952_v2 = vmul.f32 1.442695, %v935_v1  ;;  %v1274_v61 = vsub.f32 %v3260_v20, %v1250_v3 }
 0x302   : > { %v1240_v4 = vpop.xlane.xlu0 %1239 }
 0x303   : > { %2757 = vpow2.f32 %v952_v2  ;;  %v1269_v0 = vsub.f32 %v3264_v22, %v1240_v4 }
 0x304   : > { %v917_v12 = vpop.xlane.xlu1 %916 }
 0x305   : > { %v1287_v7 = vmul.f32 1.442695, %v1269_v0  ;;  %v941_v60 = vsub.f32 %v3268_v23, %v917_v12 }
 0x306   : > { %v1242_v9 = vpop.xlane.xlu0 %1241 }
 0x307   : > { %2759 = vpow2.f32 %v1287_v7  ;;  %v1270_v22 = vsub.f32 %v3272_v26, %v1242_v9  ;;  %v964_v63 = vmul.f32 1.442695, %v941_v60 }
 0x308   : > { %2761 = vpow2.f32 %v1283_v11  ;;  %v3389_v19 = vpop.xlane.xlu1 %1253 }
 0x309   : > { %v3383_v14 = vpop.eup %2755  ;;  %v1289_v32 = vmul.f32 1.442695, %v1270_v22 }
 0x30a   : > { %v907_v16 = vpop.xlane.xlu0 %906  ;;  %982 = vadd.xlane.f32.xlu0 %v3383_v14 }
 0x30b   : > { %v936_v17 = vsub.f32 %v3280_v30, %v907_v16  ;;  %v1268_v30 = vsub.f32 %v3244_v13, %v1238_v58 }
 0x30c   : > { %v921_v33 = vpop.xlane.xlu1 %920 }
 0x30d   : > { %v3387_v18 = vpop.eup %2757  ;;  %v954_v10 = vmul.f32 1.442695, %v936_v17  ;;  %v1285_v26 = vmul.f32 1.442695, %v1268_v30 }
 0x30e   : > { %v909_v21 = vpop.xlane.xlu0 %908  ;;  %984 = vadd.xlane.f32.xlu1 %v3387_v18 }
 0x30f   : > { %2763 = vpow2.f32 %v954_v10  ;;  %v937_v24 = vsub.f32 %v3288_v34, %v909_v21  ;;  %v3041_v21 = vmov 0.0  }
 0x310   : > { %v3404_v57 = vpop.xlane.xlu1 %1257  ;;  %2585 = vmatprep.subr.bf16.mxu0 %v3041_v21  ;;  %2623 = vmatprep.subr.bf16.mxu1 %v3041_v21 }
 0x311   : > { %v3394_v25 = vpop.eup %2759  ;;  %v956_v27 = vmul.f32 1.442695, %v937_v24  ;;  %2601 = vmatprep.mubr.msk.bf16.mxu0 %vm3042_vm4, %v3041_v21  ;;  %2639 = vmatprep.mubr.msk.bf16.mxu1 %vm3042_vm4, %v3041_v21 }
 0x312   : > { %v1244_v28 = vpop.xlane.xlu0 %1243  ;;  %1319 = vadd.xlane.f32.xlu0 %v3394_v25  ;;  %v3398_v36 = vpop.eup %2761 }
 0x313   : > { %2765 = vpow2.f32 %v956_v27  ;;  %v1271_v2 = vsub.f32 %v3295_v38, %v1244_v28 }
 0x314   : > { %2767 = vpow2.f32 %v1289_v32  ;;  %v925_v4 = vpop.xlane.xlu1 %924 }
 0x315   : > { %2769 = vpow2.f32 %v1285_v26  ;;  %v1291_v20 = vmul.f32 1.442695, %v1271_v2  ;;  %v945_v22 = vsub.f32 %v3300_v39, %v925_v4 }
 0x316   : > { %v1246_v47 = vpop.xlane.xlu0 %1245  ;;  %1315 = vadd.xlane.f32.xlu0 %v3398_v36  ;;  %2771 = vpow2.f32 %v960_v59 }
 0x317   : > { %v1272_v7 = vsub.f32 %v3303_v40, %v1246_v47  ;;  %v972_v39 = vmul.f32 1.442695, %v945_v22 }
 0x318   : > { %v3422_v38 = vpop.xlane.xlu1 %1261 }
 0x319   : > { %v3402_v34 = vpop.eup %2763  ;;  %v1293_v12 = vmul.f32 1.442695, %v1272_v7  ;;  %v1280_v22 = vsub.f32 %v3308_v41, %v3422_v38 }
 0x31a   : > { %v911_v13 = vpop.xlane.xlu0 %910  ;;  %986 = vadd.xlane.f32.xlu0 %v3402_v34 }
 0x31b   : > { %v938_v58 = vsub.f32 %v3313_v42, %v911_v13  ;;  %v1297_v42 = vmul.f32 1.442695, %v1274_v61 }
 0x31c   : > { %v929_v24 = vpop.xlane.xlu1 %928 }
 0x31d   : > { %v3409_v62 = vpop.eup %2765  ;;  %v958_v15 = vmul.f32 1.442695, %v938_v58 }
 0x31e   : > { %v1248_v1 = vpop.xlane.xlu0 %1247  ;;  %988 = vadd.xlane.f32.xlu1 %v3409_v62  ;;  %v3415_v6 = vpop.eup %2767 }
 0x31f   : > { %2773 = vpow2.f32 %v958_v15  ;;  %v1273_v23 = vsub.f32 %v3321_v44, %v1248_v1  ;;  %v3420_v11 = vpop.eup %2769  ;;  %v943_v44 = vsub.f32 %v3284_v31, %v921_v33  ;;  %v1278_v33 = vsub.f32 %v3291_v35, %v3404_v57 }
 0x320   : > { %2775 = vpow2.f32 %v964_v63  ;;  %v3426_v17 = vpop.eup %2771  ;;  %v1266_v60 = vpop.xlane.xlu1 %1265  ;;  %v1276_v35 = vsub.f32 %v3276_v29, %v3389_v19  ;;  %v947_v1 = vsub.f32 %v3317_v43, %v929_v24 }
 0x321   : > { %v1295_v0 = vmul.f32 1.442695, %v1273_v23  ;;  %v1305_v57 = vmul.f32 1.442695, %v1278_v33 }
 0x322   : > { %v915_v9 = vpop.xlane.xlu0 %914  ;;  %1321 = vadd.xlane.f32.xlu1 %v3415_v6  ;;  %v1301_v63 = vmul.f32 1.442695, %v1276_v35  ;;  %v588_v35 = vld [vmem:[%s4006_s7] sm:$0xff] }
 0x323   : > { %2777 = vpow2.f32 %v1295_v0  ;;  %v940_v3 = vsub.f32 %v3330_v46, %v915_v9  ;;  %v968_v46 = vmul.f32 1.442695, %v943_v44 }
 0x324   : > { %2779 = vpow2.f32 %v1297_v42  ;;  %v933_v19 = vpop.xlane.xlu1 %932 }
 0x325   : > { %2781 = vpow2.f32 %v1291_v20  ;;  %v962_v40 = vmul.f32 1.442695, %v940_v3  ;;  %v949_v0 = vsub.f32 %v3338_v48, %v933_v19  ;;  %v1282_v3 = vsub.f32 %v3324_v45, %v1266_v60  ;;  %v1461_v19 = vld [vmem:[%s4009_s10] sm:$0xff] }
 0x326   : > { %v1252_v16 = vpop.xlane.xlu0 %1251  ;;  %1317 = vadd.xlane.f32.xlu1 %v3420_v11  ;;  %2783 = vpow2.f32 %v1293_v12 }
 0x327   : > { %2785 = vpow2.f32 %v962_v40  ;;  %v1275_v47 = vsub.f32 %v3343_v49, %v1252_v16  ;;  %v980_v44 = vmul.f32 1.442695, %v949_v0  ;;  %v1313_v45 = vmul.f32 1.442695, %v1282_v3 }
 0x328   : > { %2787 = vpow2.f32 %v968_v46 }
 0x329   : > { %v3428_v10 = vpop.eup %2773  ;;  %v1299_v49 = vmul.f32 1.442695, %v1275_v47 }
 0x32a   : > { %v919_v31 = vpop.xlane.xlu0 %918  ;;  %990 = vadd.xlane.f32.xlu0 %v3428_v10  ;;  %992 = vadd.xlane.f32.xlu1 %v3426_v17  ;;  %v3436_v28 = vpop.eup %2775 }
 0x32b   : > { %v942_v27 = vsub.f32 %v3349_v50, %v919_v31 }
 0x32d   : > { %v3438_v30 = vpop.eup %2777  ;;  %v966_v32 = vmul.f32 1.442695, %v942_v27 }
 0x32e   : > { %v1256_v37 = vpop.xlane.xlu0 %1255  ;;  %1327 = vadd.xlane.f32.xlu0 %v3438_v30  ;;  %996 = vadd.xlane.f32.xlu1 %v3436_v28  ;;  %v3446_v26 = vpop.eup %2779 }
 0x32f   : > { %2789 = vpow2.f32 %v966_v32  ;;  %v1277_v50 = vsub.f32 %v3353_v51, %v1256_v37  ;;  %v3448_v59 = vpop.eup %2781  ;;  %v1309_v32 = vmul.f32 1.442695, %v1280_v22 }
 0x330   : > { %2791 = vpow2.f32 %v972_v39  ;;  %v3455_v15 = vpop.eup %2783 }
 0x331   : > { %v1303_v13 = vmul.f32 1.442695, %v1277_v50  ;;  %v3457_v61 = vpop.eup %2785 }
 0x332   : > { %v923_v58 = vpop.xlane.xlu0 %922  ;;  %1323 = vadd.xlane.f32.xlu0 %v3448_v59  ;;  %1329 = vadd.xlane.f32.xlu1 %v3446_v26  ;;  %v3462_v4 = vpop.eup %2787 }
 0x333   : > { %2793 = vpow2.f32 %v1303_v13  ;;  %v944_v51 = vsub.f32 %v3358_v52, %v923_v58  ;;  %v976_v52 = vmul.f32 1.442695, %v947_v1  ;;  %v587_v13 = vld [vmem:[%s4005_s6 + $0x8] sm:$0xff]  ;;  %v3527_v58 = vpop.f32.mrb[4].mxu0 }
 0x334   : > { %2795 = vpow2.f32 %v1305_v57  ;;  %v586_v57 = vld [vmem:[%s4005_s6] sm:$0xff] }
 0x335   : > { %2797 = vpow2.f32 %v1299_v49  ;;  %v970_v2 = vmul.f32 1.442695, %v944_v51  ;;  %v3529_v49 = vpop.f32.mrb[5].mxu0 }
 0x336   : > { %994 = vadd.xlane.f32.xlu0 %v3457_v61  ;;  %v1260_v29 = vpop.xlane.xlu0 %1259  ;;  %1325 = vadd.xlane.f32.xlu1 %v3455_v15  ;;  %2799 = vpow2.f32 %v1301_v63  ;;  %v3531_v51 = vpop.f32.mrb[6].mxu0  ;;  %v590_v63 = vld [vmem:[%s4007_s8] sm:$0xff] }
 0x337   : > { %2801 = vpow2.f32 %v970_v2  ;;  %v1279_v12 = vsub.f32 %v3362_v53, %v1260_v29  ;;  %v3536_v1 = vpop.f32.mrb[7].mxu0  ;;  %v589_v29 = vld [vmem:[%s4006_s7 + $0x8] sm:$0xff] }
 0x338   : > { %2803 = vpow2.f32 %v976_v52  ;;  %v591_v2 = vld [vmem:[%s4007_s8 + $0x8] sm:$0xff]  ;;  %v1463_v52 = vld [vmem:[%s4011_s12] sm:$0xff] }
 0x339   : > { %v3464_v23 = vpop.eup %2789  ;;  %v1307_v24 = vmul.f32 1.442695, %v1279_v12 }
 0x33a   : > { %998 = vadd.xlane.f32.xlu0 %v3464_v23  ;;  %v927_v42 = vpop.xlane.xlu0 %926  ;;  %1000 = vadd.xlane.f32.xlu1 %v3462_v4  ;;  %v3470_v7 = vpop.eup %2791 }
 0x33b   : > { %v946_v43 = vsub.f32 %v3367_v54, %v927_v42 }
 0x33d   : > { %v3472_v9 = vpop.eup %2793  ;;  %v974_v20 = vmul.f32 1.442695, %v946_v43 }
 0x33e   : > { %1335 = vadd.xlane.f32.xlu0 %v3472_v9  ;;  %v1264_v48 = vpop.xlane.xlu0 %1263  ;;  %1004 = vadd.xlane.f32.xlu1 %v3470_v7  ;;  %v3479_v54 = vpop.eup %2795 }
 0x33f   : > { %2805 = vpow2.f32 %v974_v20  ;;  %v1281_v16 = vsub.f32 %v3371_v55, %v1264_v48  ;;  %v3481_v40 = vpop.eup %2797 }
 0x340   : > { %2807 = vpow2.f32 %v980_v44  ;;  %v3488_v55 = vpop.eup %2799 }
 0x341   : > { %v1311_v46 = vmul.f32 1.442695, %v1281_v16  ;;  %v3490_v27 = vpop.eup %2801 }
 0x342   : > { %1331 = vadd.xlane.f32.xlu0 %v3481_v40  ;;  %v931_v31 = vpop.xlane.xlu0 %930  ;;  %1337 = vadd.xlane.f32.xlu1 %v3479_v54  ;;  %v3494_v38 = vpop.eup %2803 }
 0x343   : > { %2809 = vpow2.f32 %v1311_v46  ;;  %v948_v53 = vsub.f32 %v3376_v56, %v931_v31 }
 0x344   : > { %2811 = vpow2.f32 %v1313_v45 }
 0x345   : > { %2813 = vpow2.f32 %v1307_v24  ;;  %v978_v41 = vmul.f32 1.442695, %v948_v53 }
 0x346   : > { %1002 = vadd.xlane.f32.xlu0 %v3490_v27  ;;  %1333 = vadd.xlane.f32.xlu1 %v3488_v55  ;;  %2815 = vpow2.f32 %v1309_v32 }
 0x347   : > { %2817 = vpow2.f32 %v978_v41 }
 0x349   : > { %v3496_v33 = vpop.eup %2805 }
 0x34a   : > { %1006 = vadd.xlane.f32.xlu0 %v3496_v33  ;;  %1008 = vadd.xlane.f32.xlu1 %v3494_v38  ;;  %v3500_v56 = vpop.eup %2807 }
 0x34d   : > { %v3502_v39 = vpop.eup %2809 }
 0x34e   : > { %1343 = vadd.xlane.f32.xlu0 %v3502_v39  ;;  %1012 = vadd.xlane.f32.xlu1 %v3500_v56  ;;  %v3506_v37 = vpop.eup %2811 }
 0x34f   : > { %v3508_v47 = vpop.eup %2813 }
 0x350   : > { %v3512_v50 = vpop.eup %2815 }
 0x351   : > { %v3514_v60 = vpop.eup %2817 }
 0x352   : > { %1339 = vadd.xlane.f32.xlu0 %v3508_v47  ;;  %1345 = vadd.xlane.f32.xlu1 %v3506_v37 }
 0x356   : > { %1010 = vadd.xlane.f32.xlu0 %v3514_v60  ;;  %1341 = vadd.xlane.f32.xlu1 %v3512_v50 }
 0x367   : > { %700 = vperm.xlu1 %2752, %v587_v13  }
 0x36b   : > { %1434 = vperm.xlu1 %2752, %v588_v35  }
 0x36c   : > { %695 = vperm.xlu0 %2751, %v586_v57  }
 0x36f   : > { %1448 = vperm.xlu1 %2752, %v590_v63  }
 0x370   : > { %1439 = vperm.xlu0 %2751, %v589_v29  }
 0x373   : > { %1476 = vperm.xlu1 %2752, %v1461_v19  }
 0x374   : > { %1453 = vperm.xlu0 %2751, %v591_v2  }
 0x378   : > { %1525 = vperm.xlu0 %2751, %v1463_v52  }
 0x397   : > { %v983_v0 = vpop.xlane.xlu0 %982 }
 0x398   : > { %2819 = vrcp.f32 %v983_v0 }
 0x39b   : > { %v985_v42 = vpop.xlane.xlu1 %984 }
 0x39c   : > { %2821 = vrcp.f32 %v985_v42 }
 0x39f   : > { %v1320_v43 = vpop.xlane.xlu0 %1319 }
 0x3a2   : > { %v2820_v3 = vpop.eup %2819 }
 0x3a3   : > { %v1316_v20 = vpop.xlane.xlu0 %1315  ;;  %v1030_v12 = vmul.f32 %v2820_v3, %v3383_v14 }
 0x3a6   : > { %v2822_v44 = vpop.eup %2821 }
 0x3a7   : > { %v987_v48 = vpop.xlane.xlu0 %986  ;;  %v1031_v16 = vmul.f32 %v2822_v44, %v3387_v18 }
 0x3a8   : > { %2823 = vrcp.f32 %v987_v48 }
 0x3a9   : > { %v1046_v46 = vpack.c.bf16 %v1031_v16, %v1030_v12 }
 0x3ab   : > { %2586 = vmatpush3.bf16.xpose.msra.mxu0 %v1046_v46  ;;  %v989_v22 = vpop.xlane.xlu1 %988 }
 0x3ac   : > { %2825 = vrcp.f32 %v989_v22  ;;  %2587 = vmatprep.subr.bf16.mxu0 %v3041_v21 }
 0x3ad   : > { %2827 = vrcp.f32 %v1316_v20 }
 0x3af   : > { %v1322_v45 = vpop.xlane.xlu1 %1321 }
 0x3b2   : > { %v2824_v24 = vpop.eup %2823 }
 0x3b3   : > { %v1318_v31 = vpop.xlane.xlu1 %1317  ;;  %v1032_v14 = vmul.f32 %v2824_v24, %v3402_v34 }
 0x3b4   : > { %2829 = vrcp.f32 %v1318_v31 }
 0x3b5   : > { %2831 = vrcp.f32 %v1322_v45 }
 0x3b6   : > { %v2826_v53 = vpop.eup %2825 }
 0x3b7   : > { %v991_v32 = vpop.xlane.xlu0 %990  ;;  %v993_v41 = vpop.xlane.xlu1 %992  ;;  %v1033_v18 = vmul.f32 %v2826_v53, %v3409_v62 }
 0x3b8   : > { %2833 = vrcp.f32 %v991_v32  ;;  %v2828_v63 = vpop.eup %2827 }
 0x3b9   : > { %2835 = vrcp.f32 %v993_v41  ;;  %v1047_v13 = vpack.c.bf16 %v1033_v18, %v1032_v14  ;;  %v1363_v52 = vmul.f32 %v2828_v63, %v3398_v36 }
 0x3ba   : > { %2837 = vrcp.f32 %v1320_v43 }
 0x3bb   : > { %v1328_v35 = vpop.xlane.xlu0 %1327  ;;  %2588 = vmatpush3.bf16.xpose.msra.mxu0 %v1047_v13  ;;  %v997_v57 = vpop.xlane.xlu1 %996 }
 0x3bc   : > { %2589 = vmatprep.subr.bf16.mxu0 %v3041_v21  ;;  %2839 = vrcp.f32 %v997_v57 }
 0x3be   : > { %v2830_v29 = vpop.eup %2829 }
 0x3bf   : > { %v1324_v19 = vpop.xlane.xlu0 %1323  ;;  %v1330_v2 = vpop.xlane.xlu1 %1329  ;;  %v1364_v0 = vmul.f32 %v2830_v29, %v3420_v11 }
 0x3c0   : > { %v2832_v34 = vpop.eup %2831  ;;  %2841 = vrcp.f32 %v1324_v19 }
 0x3c1   : > { %v1379_v42 = vpack.c.bf16 %v1364_v0, %v1363_v52  ;;  %v1366_v36 = vmul.f32 %v2832_v34, %v3415_v6 }
 0x3c2   : > { %v2834_v62 = vpop.eup %2833 }
 0x3c3   : > { %v2836_v20 = vpop.eup %2835  ;;  %v995_v43 = vpop.xlane.xlu0 %994  ;;  %2624 = vmatpush3.bf16.xpose.msra.mxu1 %v1379_v42  ;;  %v1034_v44 = vmul.f32 %v2834_v62, %v3428_v10 }
 0x3c4   : > { %v1326_v3 = vpop.xlane.xlu1 %1325  ;;  %v2838_v48 = vpop.eup %2837  ;;  %2843 = vrcp.f32 %v995_v43  ;;  %v1035_v12 = vmul.f32 %v2836_v20, %v3426_v17  ;;  %2625 = vmatprep.subr.bf16.mxu1 %v3041_v21 }
 0x3c5   : > { %2845 = vrcp.f32 %v1326_v3  ;;  %v1365_v22 = vmul.f32 %v2838_v48, %v3394_v25 }
 0x3c6   : > { %v1048_v11 = vpack.c.bf16 %v1035_v12, %v1034_v44  ;;  %2847 = vrcp.f32 %v1330_v2  ;;  %v2840_v31 = vpop.eup %2839 }
 0x3c7   : > { %v999_v16 = vpop.xlane.xlu0 %998  ;;  %v1380_v45 = vpack.c.bf16 %v1366_v36, %v1365_v22  ;;  %v1037_v14 = vmul.f32 %v2840_v31, %v3436_v28 }
 0x3c8   : > { %v1001_v46 = vpop.xlane.xlu1 %1000  ;;  %2849 = vrcp.f32 %v999_v16  ;;  %2590 = vmatpush3.bf16.xpose.msra.mxu0 %v1048_v11 }
 0x3c9   : > { %2851 = vrcp.f32 %v1001_v46  ;;  %2591 = vmatprep.subr.bf16.mxu0 %v3041_v21 }
 0x3ca   : > { %2853 = vrcp.f32 %v1328_v35  ;;  %v2842_v6 = vpop.eup %2841 }
 0x3cb   : > { %v1336_v10 = vpop.xlane.xlu0 %1335  ;;  %2626 = vmatpush3.bf16.xpose.msra.mxu1 %v1380_v45  ;;  %v1367_v18 = vmul.f32 %v2842_v6, %v3448_v59 }
 0x3cc   : > { %v1005_v17 = vpop.xlane.xlu1 %1004  ;;  %2627 = vmatprep.subr.bf16.mxu1 %v3041_v21 }
 0x3cd   : > { %2855 = vrcp.f32 %v1005_v17 }
 0x3ce   : > { %v2844_v24 = vpop.eup %2843 }
 0x3cf   : > { %v2846_v53 = vpop.eup %2845  ;;  %v1332_v32 = vpop.xlane.xlu0 %1331  ;;  %v1036_v25 = vmul.f32 %v2844_v24, %v3457_v61 }
 0x3d0   : > { %v1338_v41 = vpop.xlane.xlu1 %1337  ;;  %v1368_v13 = vmul.f32 %v2846_v53, %v3455_v15  ;;  %v2848_v35 = vpop.eup %2847  ;;  %2857 = vrcp.f32 %v1332_v32 }
 0x3d1   : > { %v1049_v57 = vpack.c.bf16 %v1037_v14, %v1036_v25  ;;  %v1370_v15 = vmul.f32 %v2848_v35, %v3446_v26 }
 0x3d2   : > { %v2850_v63 = vpop.eup %2849  ;;  %v1381_v29 = vpack.c.bf16 %v1368_v13, %v1367_v18 }
 0x3d3   : > { %v2852_v19 = vpop.eup %2851  ;;  %v1003_v2 = vpop.xlane.xlu0 %1002  ;;  %2592 = vmatpush3.bf16.xpose.msra.mxu0 %v1049_v57  ;;  %v1038_v28 = vmul.f32 %v2850_v63, %v3464_v23 }
 0x3d4   : > { %v1334_v52 = vpop.xlane.xlu1 %1333  ;;  %2859 = vrcp.f32 %v1003_v2  ;;  %2628 = vmatpush3.bf16.xpose.msra.mxu1 %v1381_v29  ;;  %2593 = vmatprep.subr.bf16.mxu0 %v3041_v21  ;;  %v2854_v61 = vpop.eup %2853  ;;  %v1039_v59 = vmul.f32 %v2852_v19, %v3462_v4 }
 0x3d5   : > { %2861 = vrcp.f32 %v1334_v52  ;;  %2629 = vmatprep.subr.bf16.mxu1 %v3041_v21  ;;  %v1369_v42 = vmul.f32 %v2854_v61, %v3438_v30 }
 0x3d6   : > { %2863 = vrcp.f32 %v1338_v41  ;;  %v1050_v62 = vpack.c.bf16 %v1039_v59, %v1038_v28 }
 0x3d7   : > { %v1007_v0 = vpop.xlane.xlu0 %1006  ;;  %v1382_v20 = vpack.c.bf16 %v1370_v15, %v1369_v42  ;;  %v2856_v44 = vpop.eup %2855 }
 0x3d8   : > { %v1009_v34 = vpop.xlane.xlu1 %1008  ;;  %2865 = vrcp.f32 %v1007_v0  ;;  %v1041_v36 = vmul.f32 %v2856_v44, %v3470_v7 }
 0x3d9   : > { %2867 = vrcp.f32 %v1009_v34 }
 0x3da   : > { %2869 = vrcp.f32 %v1336_v10  ;;  %v2858_v4 = vpop.eup %2857 }
 0x3db   : > { %v1344_v43 = vpop.xlane.xlu0 %1343  ;;  %2594 = vmatpush3.bf16.xpose.msra.mxu0 %v1050_v62  ;;  %v1371_v11 = vmul.f32 %v2858_v4, %v3481_v40 }
 0x3dc   : > { %v1013_v3 = vpop.xlane.xlu1 %1012  ;;  %2630 = vmatpush3.bf16.xpose.msra.mxu1 %v1382_v20  ;;  %2595 = vmatprep.subr.bf16.mxu0 %v3041_v21 }
 0x3dd   : > { %2631 = vmatprep.subr.bf16.mxu1 %v3041_v21  ;;  %2871 = vrcp.f32 %v1013_v3 }
 0x3de   : > { %v2860_v26 = vpop.eup %2859 }
 0x3df   : > { %v2862_v23 = vpop.eup %2861  ;;  %v1340_v48 = vpop.xlane.xlu0 %1339  ;;  %v1040_v30 = vmul.f32 %v2860_v26, %v3490_v27 }
 0x3e0   : > { %v1346_v12 = vpop.xlane.xlu1 %1345  ;;  %v1372_v16 = vmul.f32 %v2862_v23, %v3488_v55  ;;  %v2864_v46 = vpop.eup %2863  ;;  %2873 = vrcp.f32 %v1340_v48 }
 0x3e1   : > { %v1051_v22 = vpack.c.bf16 %v1041_v36, %v1040_v30  ;;  %v1374_v55 = vmul.f32 %v2864_v46, %v3479_v54 }
 0x3e2   : > { %v2866_v45 = vpop.eup %2865  ;;  %v1383_v10 = vpack.c.bf16 %v1372_v16, %v1371_v11 }
 0x3e3   : > { %v2868_v17 = vpop.eup %2867  ;;  %v1011_v31 = vpop.xlane.xlu0 %1010  ;;  %2596 = vmatpush3.bf16.xpose.msra.mxu0 %v1051_v22  ;;  %v1042_v7 = vmul.f32 %v2866_v45, %v3496_v33  ;;  %v1460_v45 = vld [vmem:[%s4008_s9] sm:$0xf] }
 0x3e4   : > { %v1342_v6 = vpop.xlane.xlu1 %1341  ;;  %2875 = vrcp.f32 %v1011_v31  ;;  %2632 = vmatpush3.bf16.xpose.msra.mxu1 %v1383_v10  ;;  %2597 = vmatprep.subr.bf16.mxu0 %v3041_v21  ;;  %v2870_v27 = vpop.eup %2869  ;;  %v1043_v40 = vmul.f32 %v2868_v17, %v3494_v38  ;;  %v1462_v10 = vld [vmem:[%s4010_s11] sm:$0xf] }
 0x3e5   : > { %2877 = vrcp.f32 %v1342_v6  ;;  %2633 = vmatprep.subr.bf16.mxu1 %v3041_v21  ;;  %v1373_v53 = vmul.f32 %v2870_v27, %v3472_v9  ;;  %v2754_v17 = vld [vmem:[%s4012_s13] sm:$0xff]  }
 0x3e6   : > { %2879 = vrcp.f32 %v1346_v12  ;;  %v1052_v32 = vpack.c.bf16 %v1043_v40, %v1042_v7 }
 0x3e7   : > { %v1384_v41 = vpack.c.bf16 %v1374_v55, %v1373_v53  ;;  %2881 = vrcp.f32 %v1344_v43  ;;  %v2872_v13 = vpop.eup %2871 }
 0x3e8   : > { %v701_v24 = vpop.permute.xlu1 %700  ;;  %v1045_v63 = vmul.f32 %v2872_v13, %v3500_v56 }
 0x3e9   : > { %v750_v25 = vadd.f32 %v3531_v51, %v701_v24  ;;  %v752_v14 = vadd.f32 %v3536_v1, %v701_v24 }
 0x3ea   : > { %v2874_v54 = vpop.eup %2873 }
 0x3eb   : > { %v696_v18 = vpop.permute.xlu0 %695  ;;  %2598 = vmatpush3.bf16.xpose.msra.mxu0 %v1052_v32  ;;  %v1375_v29 = vmul.f32 %v2874_v54, %v3508_v47 }
 0x3ec   : > { %v746_v33 = vadd.f32 %v3527_v58, %v696_v18  ;;  %v748_v38 = vadd.f32 %v3529_v49, %v696_v18  ;;  %2634 = vmatpush3.bf16.xpose.msra.mxu1 %v1384_v41  ;;  %2599 = vmatprep.subr.bf16.mxu0 %v3041_v21  ;;  %v1435_v56 = vpop.permute.xlu1 %1434 }
 0x3ed   : > { %2635 = vmatprep.subr.bf16.mxu1 %v3041_v21 }
 0x3ee   : > { %v2876_v9 = vpop.eup %2875  ;;  %v758_v35 = vpack.c.bf16 %v750_v25, %v746_v33  ;;  %v759_v57 = vpack.c.bf16 %v752_v14, %v748_v38 }
 0x3ef   : > { %v2878_v51 = vpop.eup %2877  ;;  %v1044_v1 = vmul.f32 %v2876_v9, %v3514_v60  ;;  %v1440_v47 = vpop.permute.xlu0 %1439 }
 0x3f0   : > { %v1376_v58 = vmul.f32 %v2878_v51, %v3512_v50  ;;  %v2880_v2 = vpop.eup %2879 }
 0x3f1   : > { %v1053_v19 = vpack.c.bf16 %v1045_v63, %v1044_v1  ;;  %v2882_v52 = vpop.eup %2881  ;;  %v1378_v61 = vmul.f32 %v2880_v2, %v3506_v37  ;;  %v1449_v37 = vpop.permute.xlu1 %1448 }
 0x3f2   : > { %v1385_v49 = vpack.c.bf16 %v1376_v58, %v1375_v29  ;;  %v1377_v28 = vmul.f32 %v2882_v52, %v3502_v39 }
 0x3f3   : > { %2600 = vmatpush3.bf16.xpose.msra.mxu0 %v1053_v19  ;;  %v1454_v43 = vpop.permute.xlu0 %1453 }
 0x3f4   : > { %2636 = vmatpush3.bf16.xpose.msra.mxu1 %v1385_v49  ;;  %v1386_v60 = vpack.c.bf16 %v1378_v61, %v1377_v28 }
 0x3f5   : > { %2637 = vmatprep.subr.bf16.mxu1 %v3041_v21  ;;  %v1477_v31 = vpop.permute.xlu1 %1476 }
 0x3f7   : > { %v1526_v41 = vpop.permute.xlu0 %1525 }
 0x3fa   : > { %2602 = vmatmul.mubr.bf16.vlgmr.msra.gmra.mrb[8].mxu0 %v758_v35 }
 0x3fb   : > { %1514 = vmatprep.mubr.bf16.mxu0 %v3039_v5 }
 0x3fc   : > { %2638 = vmatpush3.bf16.xpose.msra.mxu1 %v1386_v60 }
 0x403   : > { %2640 = vmatmul.mubr.bf16.vlgmr.msra.gmra.mrb[36].mxu1 %v759_v57 }
 0x4cd   : > { %v1088_v50 = vpop.f32.mrb[8].mxu0 }
 0x4ce   : > { %v1428_v59 = vmax.f32 %v1088_v50, 0.0  ;;  %v2603_v15 = vpop.f32.mrb[9].mxu0 }
 0x4cf   : > { %v1091_v0 = vpop.f32.mrb[10].mxu0 }
 0x4d0   : > { %v1442_v34 = vmul.f32 %v1435_v56, %v1428_v59  ;;  %v1430_v42 = vmax.f32 %v1091_v0, 0.0  ;;  %v2604_v62 = vpop.f32.mrb[11].mxu0 }
 0x4d2   : > { %v1444_v20 = vmul.f32 %v1440_v47, %v1430_v42  ;;  %v1456_v3 = vadd.f32 %v1449_v37, %v1442_v34 }
 0x4d4   : > { %v1458_v39 = vadd.f32 %v1454_v43, %v1444_v20 }
 0x4d6   : > { %v1472_v44 = vpack.c.bf16 %v1458_v39, %v1456_v3  ;;  %v1421_v4 = vpop.f32.mrb[36].mxu1 }
 0x4d7   : > { %v1429_v26 = vmax.f32 %v1421_v4, 0.0  ;;  %v2641_v23 = vpop.f32.mrb[37].mxu1 }
 0x4d8   : > { %v1424_v48 = vpop.f32.mrb[38].mxu1 }
 0x4d9   : > { %v1443_v12 = vmul.f32 %v1435_v56, %v1429_v26  ;;  %v1431_v30 = vmax.f32 %v1424_v48, 0.0  ;;  %v2642_v36 = vpop.f32.mrb[39].mxu1 }
 0x4db   : > { %v1445_v11 = vmul.f32 %v1440_v47, %v1431_v30  ;;  %v1457_v16 = vadd.f32 %v1449_v37, %v1443_v12 }
 0x4dd   : > { %v1459_v46 = vadd.f32 %v1454_v43, %v1445_v11 }
 0x4df   : > { %v1473_v22 = vpack.c.bf16 %v1459_v46, %v1457_v16 }
 0x4e1   : > { %1482 = vmatprep.subr.bf16.mxu0 %v1473_v22 }
 0x4e2   : > { %1483 = vmatpush1.bf16.msra.mxu0 %v1472_v44 }
 0x4e3   : > { %1531 = vmatprep.subr.bf16.mxu0 %v1473_v22 }
 0x4e5   : > { %2468 = vmatmul.mubr.msk.bf16.vlgmr.msra.gmra.mrb[12].mxu0 %vm599_vm0, %v1460_v45 }
 0x4e6   : > { %1532 = vmatpush1.bf16.msra.mxu0 %v1472_v44  ;;  %1563 = vmatprep.mubr.bf16.mxu0 %v3039_v5 }
 0x4e7   : > { %1590 = vmatprep.subr.bf16.mxu0 %v1473_v22 }
 0x4ed   : > { %2469 = vmatmul.mubr.msk.bf16.vlgmr.msra.gmra.mrb[16].mxu0 %vm599_vm0, %v1462_v10 }
 0x4ee   : > { %1591 = vmatpush1.bf16.msra.mxu0 %v1472_v44  ;;  %1622 = vmatprep.mubr.bf16.mxu0 %v3039_v5 }
 0x4f5   : > { %2471 = vmatmul.mubr.msk.bf16.vlgmr.msra.gmra.mrb[20].mxu0 %vm599_vm0, %v2754_v17 }
 0x5b8   : > { %v1516_v6 = vpop.f32.mrb[12].mxu0 }
 0x5b9   : > { %v1517_v27 = vadd.f32 %v1516_v6, %v1477_v31  ;;  %v1518_v7 = vpop.f32.mrb[13].mxu0 }
 0x5ba   : > { %v1519_v40 = vadd.f32 %v1518_v7, %v1477_v31  ;;  %v1520_v55 = vpop.f32.mrb[14].mxu0 }
 0x5bb   : > { %v1633_v24 = vpack.c.bf16 %v1517_v27, %v1517_v27  ;;  %v1521_v53 = vpop.f32.mrb[15].mxu0 }
 0x5bc   : > { %v1634_v32 = vpack.c.bf16 %v1519_v40, %v1519_v40 }
 0x5bd   : > { %1639 = vxpose.xlu1.c.b16.start.end [1/1] (short) %v1633_v24, 128 }
 0x5be   : > { %1972 = vxpose.xlu0.c.b16.start.end [1/1] (short) %v1634_v32, 128 }
 0x5c0   : > { %v1565_v25 = vpop.f32.mrb[16].mxu0 }
 0x5c1   : > { %v1566_v5 = vadd.f32 %v1565_v25, %v1526_v41  ;;  %v1567_v14 = vpop.f32.mrb[17].mxu0 }
 0x5c2   : > { %v1568_v18 = vadd.f32 %v1567_v14, %v1526_v41  ;;  %v1569_v13 = vpop.f32.mrb[18].mxu0 }
 0x5c3   : > { %v1635_v33 = vpack.c.bf16 %v1566_v5, %v1566_v5  ;;  %v1570_v38 = vpop.f32.mrb[19].mxu0 }
 0x5c4   : > { %v1636_v54 = vpack.c.bf16 %v1568_v18, %v1568_v18 }
 0x5c5   : > { %v1680_v9 = vsel %vm801_vm1, %v1635_v33, 0  ;;  %2721 = vmatprep.subr.msk.bf16.mxu0 %vm801_vm1, %v1635_v33 }
 0x5c6   : > { %v2013_v35 = vsel %vm801_vm1, %v1636_v54, 0  ;;  %2644 = vmatpush3.bf16.msra.mxu0 %v1680_v9  ;;  %2722 = vmatprep.subr.msk.bf16.mxu1 %vm801_vm1, %v1636_v54 }
 0x5c7   : > { %2682 = vmatpush3.bf16.msra.mxu1 %v2013_v35  ;;  %2661 = vmatprep.subr.bf16.mxu0 %v3041_v21 }
 0x5c8   : > { %2699 = vmatprep.subr.bf16.mxu1 %v3041_v21  ;;  %v3625_v57 = vpop.f32.mrb[20].mxu0 }
 0x5c9   : > { %v3627_v51 = vpop.f32.mrb[21].mxu0 }
 0x5ca   : > { %v3629_v1 = vpop.f32.mrb[22].mxu0 }
 0x5cb   : > { %v3631_v63 = vpop.f32.mrb[23].mxu0 }
 0x623   : > { %v1647_v29 = vpop.trf.xlu1 }
 0x624   : > { %v1980_v58 = vpop.trf.xlu0  ;;  %2645 = vmatprep.mubr.msk.bf16.mxu0 %vm776_vm2, %v1647_v29 }
 0x625   : > { %2683 = vmatprep.mubr.msk.bf16.mxu1 %vm776_vm2, %v1980_v58 }
 0x627   : > { %v1648_v19 = vpop.trf.xlu1 }
 0x628   : > { %2646 = vmatmul.mubr.msk.bf16.vlgmr.msra.gmra.mrb[24].mxu0 %vm776_vm2, %v1648_v19  ;;  %v1981_v49 = vpop.trf.xlu0 }
 0x629   : > { %2684 = vmatmul.mubr.msk.bf16.vlgmr.msra.gmra.mrb[40].mxu1 %vm776_vm2, %v1981_v49 }
 0x62b   : > { %v1649_v2 = vpop.trf.xlu1 }
 0x62c   : > { %v1982_v52 = vpop.trf.xlu0  ;;  %2649 = vmatprep.mubr.msk.bf16.mxu0 %vm776_vm2, %v1649_v2 }
 0x62d   : > { %2687 = vmatprep.mubr.msk.bf16.mxu1 %vm776_vm2, %v1982_v52 }
 0x62f   : > { %v1650_v61 = vpop.trf.xlu1 }
 0x630   : > { %2650 = vmatmul.mubr.msk.bf16.gmra.mrb[28].mxu0 %vm776_vm2, %v1650_v61  ;;  %v1983_v28 = vpop.trf.xlu0 }
 0x631   : > { %2688 = vmatmul.mubr.msk.bf16.gmra.mrb[44].mxu1 %vm776_vm2, %v1983_v28 }
 0x633   : > { %v1651_v60 = vpop.trf.xlu1 }
 0x634   : > { %v1984_v56 = vpop.trf.xlu0  ;;  %2653 = vmatprep.mubr.msk.bf16.mxu0 %vm776_vm2, %v1651_v60 }
 0x635   : > { %2691 = vmatprep.mubr.msk.bf16.mxu1 %vm776_vm2, %v1984_v56 }
 0x637   : > { %v1652_v47 = vpop.trf.xlu1 }
 0x638   : > { %2654 = vmatmul.mubr.msk.bf16.gmra.mrb[32].mxu0 %vm776_vm2, %v1652_v47  ;;  %v1985_v50 = vpop.trf.xlu0 }
 0x639   : > { %2692 = vmatmul.mubr.msk.bf16.gmra.mrb[48].mxu1 %vm776_vm2, %v1985_v50 }
 0x63b   : > { %v1653_v59 = vpop.trf.xlu1 }
 0x63c   : > { %v1986_v15 = vpop.trf.xlu0  ;;  %2657 = vmatprep.mubr.msk.bf16.mxu0 %vm776_vm2, %v1653_v59 }
 0x63d   : > { %2695 = vmatprep.mubr.msk.bf16.mxu1 %vm776_vm2, %v1986_v15 }
 0x63f   : > { %v1654_v0 = vpop.trf.xlu1 }
 0x640   : > { %2658 = vmatmul.mubr.msk.bf16.gmra.mrb[36].mxu0 %vm776_vm2, %v1654_v0  ;;  %v1987_v34 = vpop.trf.xlu0 }
 0x641   : > { %2696 = vmatmul.mubr.msk.bf16.gmra.mrb[52].mxu1 %vm776_vm2, %v1987_v34  ;;  %2677 = vmatprep.mubr.msk.bf16.mxu0 %vm3042_vm4, %v3041_v21 }
 0x642   : > { %2715 = vmatprep.mubr.msk.bf16.mxu1 %vm3042_vm4, %v3041_v21 }
 0x6fb   : > { %v2647_v42 = vpop.f32.mrb[24].mxu0 }
 0x6fc   : > { %v1716_v62 = vpop.f32.mrb[25].mxu0  ;;  %v2685_v20 = vpop.f32.mrb[40].mxu1  ;;  %v3669_v11 = vadd.f32 %v2647_v42, %v3238_v8 }
 0x6fd   : > { %v3654_v43 = vadd.f32 %v1716_v62, %v3238_v8  ;;  %v2648_v37 = vpop.f32.mrb[26].mxu0  ;;  %v2049_v3 = vpop.f32.mrb[41].mxu1  ;;  %v3677_v31 = vadd.f32 %v2685_v20, %v3238_v8 }
 0x6fe   : > { %v1719_v39 = vpop.f32.mrb[27].mxu0  ;;  %v2686_v44 = vpop.f32.mrb[42].mxu1  ;;  %v3661_v26 = vadd.f32 %v2049_v3, %v3238_v8  ;;  %v3673_v10 = vadd.f32 %v2648_v37, %v3238_v8 }
 0x6ff   : > { %v3657_v4 = vadd.f32 %v1719_v39, %v3238_v8  ;;  %1779 = vmax.xlane.f32.xlu0 %v3654_v43  ;;  %v2052_v23 = vpop.f32.mrb[43].mxu1  ;;  %v3681_v6 = vadd.f32 %v2686_v44, %v3238_v8 }
 0x700   : > { %v3665_v48 = vadd.f32 %v2052_v23, %v3238_v8 }
 0x701   : > { %1781 = vmax.xlane.f32.xlu1 %v3657_v4 }
 0x703   : > { %2112 = vmax.xlane.f32.xlu0 %v3661_v26  ;;  %v2651_v12 = vpop.f32.mrb[28].mxu0 }
 0x704   : > { %v1732_v30 = vpop.f32.mrb[29].mxu0  ;;  %v2689_v36 = vpop.f32.mrb[44].mxu1  ;;  %v3701_v54 = vadd.f32 %v2651_v12, %v3238_v8 }
 0x705   : > { %2114 = vmax.xlane.f32.xlu1 %v3665_v48  ;;  %v2652_v16 = vpop.f32.mrb[30].mxu0  ;;  %v2065_v46 = vpop.f32.mrb[45].mxu1  ;;  %v3685_v27 = vadd.f32 %v1732_v30, %v3238_v8  ;;  %v3709_v2 = vadd.f32 %v2689_v36, %v3238_v8 }
 0x706   : > { %v1735_v22 = vpop.f32.mrb[31].mxu0  ;;  %v2690_v45 = vpop.f32.mrb[46].mxu1  ;;  %v3693_v5 = vadd.f32 %v2065_v46, %v3238_v8  ;;  %v3705_v19 = vadd.f32 %v2652_v16, %v3238_v8 }
 0x707   : > { %1783 = vmax.xlane.f32.xlu0 %v3669_v11  ;;  %v2068_v17 = vpop.f32.mrb[47].mxu1  ;;  %v3689_v25 = vadd.f32 %v1735_v22, %v3238_v8  ;;  %v3713_v52 = vadd.f32 %v2690_v45, %v3238_v8 }
 0x708   : > { %v3697_v18 = vadd.f32 %v2068_v17, %v3238_v8 }
 0x709   : > { %1785 = vmax.xlane.f32.xlu1 %v3673_v10 }
 0x70b   : > { %2116 = vmax.xlane.f32.xlu0 %v3677_v31  ;;  %v2655_v7 = vpop.f32.mrb[32].mxu0 }
 0x70c   : > { %v1748_v40 = vpop.f32.mrb[33].mxu0  ;;  %v2693_v55 = vpop.f32.mrb[48].mxu1  ;;  %v3733_v47 = vadd.f32 %v2655_v7, %v3238_v8 }
 0x70d   : > { %2118 = vmax.xlane.f32.xlu1 %v3681_v6  ;;  %v2656_v24 = vpop.f32.mrb[34].mxu0  ;;  %v2081_v53 = vpop.f32.mrb[49].mxu1  ;;  %v3717_v61 = vadd.f32 %v1748_v40, %v3238_v8  ;;  %v3741_v59 = vadd.f32 %v2693_v55, %v3238_v8 }
 0x70e   : > { %v1751_v32 = vpop.f32.mrb[35].mxu0  ;;  %v2694_v41 = vpop.f32.mrb[50].mxu1  ;;  %v3725_v60 = vadd.f32 %v2081_v53, %v3238_v8  ;;  %v3737_v50 = vadd.f32 %v2656_v24, %v3238_v8 }
 0x70f   : > { %1787 = vmax.xlane.f32.xlu0 %v3685_v27  ;;  %v2084_v14 = vpop.f32.mrb[51].mxu1  ;;  %v3721_v28 = vadd.f32 %v1751_v32, %v3238_v8  ;;  %v3745_v15 = vadd.f32 %v2694_v41, %v3238_v8 }
 0x710   : > { %v3729_v56 = vadd.f32 %v2084_v14, %v3238_v8 }
 0x711   : > { %1789 = vmax.xlane.f32.xlu1 %v3689_v25 }
 0x713   : > { %2120 = vmax.xlane.f32.xlu0 %v3693_v5  ;;  %v2659_v13 = vpop.f32.mrb[36].mxu0 }
 0x714   : > { %v1764_v33 = vpop.f32.mrb[37].mxu0  ;;  %v2697_v38 = vpop.f32.mrb[52].mxu1  ;;  %v3765_v20 = vadd.f32 %v2659_v13, %v3238_v8 }
 0x715   : > { %2122 = vmax.xlane.f32.xlu1 %v3697_v18  ;;  %v2660_v9 = vpop.f32.mrb[38].mxu0  ;;  %v2097_v35 = vpop.f32.mrb[53].mxu1  ;;  %v3749_v0 = vadd.f32 %v1764_v33, %v3238_v8  ;;  %v3773_v3 = vadd.f32 %v2697_v38, %v3238_v8 }
 0x716   : > { %v1767_v29 = vpop.f32.mrb[39].mxu0  ;;  %v2698_v58 = vpop.f32.mrb[54].mxu1  ;;  %v3757_v42 = vadd.f32 %v2097_v35, %v3238_v8  ;;  %v3769_v37 = vadd.f32 %v2660_v9, %v3238_v8 }
 0x717   : > { %1791 = vmax.xlane.f32.xlu0 %v3701_v54  ;;  %v2100_v49 = vpop.f32.mrb[55].mxu1  ;;  %v3753_v34 = vadd.f32 %v1767_v29, %v3238_v8  ;;  %v3777_v39 = vadd.f32 %v2698_v58, %v3238_v8 }
 0x718   : > { %v3761_v62 = vadd.f32 %v2100_v49, %v3238_v8 }
 0x719   : > { %1793 = vmax.xlane.f32.xlu1 %v3705_v19 }
 0x71b   : > { %2124 = vmax.xlane.f32.xlu0 %v3709_v2 }
 0x71d   : > { %2126 = vmax.xlane.f32.xlu1 %v3713_v52 }
 0x71f   : > { %1795 = vmax.xlane.f32.xlu0 %v3717_v61 }
 0x721   : > { %1797 = vmax.xlane.f32.xlu1 %v3721_v28 }
 0x723   : > { %2128 = vmax.xlane.f32.xlu0 %v3725_v60 }
 0x725   : > { %2130 = vmax.xlane.f32.xlu1 %v3729_v56 }
 0x727   : > { %1799 = vmax.xlane.f32.xlu0 %v3733_v47 }
 0x729   : > { %1801 = vmax.xlane.f32.xlu1 %v3737_v50 }
 0x72b   : > { %2132 = vmax.xlane.f32.xlu0 %v3741_v59 }
 0x72d   : > { %2134 = vmax.xlane.f32.xlu1 %v3745_v15 }
 0x72f   : > { %1803 = vmax.xlane.f32.xlu0 %v3749_v0 }
 0x731   : > { %1805 = vmax.xlane.f32.xlu1 %v3753_v34 }
 0x733   : > { %2136 = vmax.xlane.f32.xlu0 %v3757_v42 }
 0x735   : > { %2138 = vmax.xlane.f32.xlu1 %v3761_v62 }
 0x737   : > { %1807 = vmax.xlane.f32.xlu0 %v3765_v20 }
 0x739   : > { %1809 = vmax.xlane.f32.xlu1 %v3769_v37 }
 0x73b   : > { %2140 = vmax.xlane.f32.xlu0 %v3773_v3 }
 0x73d   : > { %2142 = vmax.xlane.f32.xlu1 %v3777_v39 }
 0x78c   : > { %v1780_v44 = vpop.xlane.xlu0 %1779 }
 0x78d   : > { %v1811_v16 = vsub.f32 %v3654_v43, %v1780_v44 }
 0x78e   : > { %v1782_v23 = vpop.xlane.xlu1 %1781 }
 0x78f   : > { %v1812_v45 = vsub.f32 %v3657_v4, %v1782_v23  ;;  %v1827_v40 = vmul.f32 1.442695, %v1811_v16 }
 0x790   : > { %v2113_v12 = vpop.xlane.xlu0 %2112 }
 0x791   : > { %v2144_v55 = vsub.f32 %v3661_v26, %v2113_v12  ;;  %v1829_v32 = vmul.f32 1.442695, %v1812_v45 }
 0x792   : > { %v2115_v30 = vpop.xlane.xlu1 %2114 }
 0x794   : > { %v1784_v36 = vpop.xlane.xlu0 %1783 }
 0x795   : > { %v1813_v46 = vsub.f32 %v3669_v11, %v1784_v36  ;;  %v2160_v11 = vmul.f32 1.442695, %v2144_v55 }
 0x796   : > { %v1786_v22 = vpop.xlane.xlu1 %1785 }
 0x797   : > { %v1831_v17 = vmul.f32 1.442695, %v1813_v46  ;;  %v1814_v8 = vsub.f32 %v3673_v10, %v1786_v22  ;;  %v2145_v10 = vsub.f32 %v3665_v48, %v2115_v30 }
 0x798   : > { %v2117_v7 = vpop.xlane.xlu0 %2116 }
 0x799   : > { %2883 = vpow2.f32 %v1831_v17  ;;  %v1833_v24 = vmul.f32 1.442695, %v1814_v8  ;;  %v2146_v14 = vsub.f32 %v3677_v31, %v2117_v7  ;;  %v2162_v35 = vmul.f32 1.442695, %v2145_v10 }
 0x79a   : > { %v2119_v53 = vpop.xlane.xlu1 %2118 }
 0x79b   : > { %2885 = vpow2.f32 %v1833_v24  ;;  %v2147_v41 = vsub.f32 %v3681_v6, %v2119_v53  ;;  %v2164_v26 = vmul.f32 1.442695, %v2146_v14 }
 0x79c   : > { %v1788_v43 = vpop.xlane.xlu0 %1787  ;;  %2887 = vpow2.f32 %v1827_v40 }
 0x79d   : > { %2889 = vpow2.f32 %v1829_v32  ;;  %v2166_v13 = vmul.f32 1.442695, %v2147_v41  ;;  %v1815_v31 = vsub.f32 %v3685_v27, %v1788_v43 }
 0x79e   : > { %v1790_v4 = vpop.xlane.xlu1 %1789  ;;  %2891 = vpow2.f32 %v2160_v11 }
 0x79f   : > { %2893 = vpow2.f32 %v2166_v13  ;;  %v1816_v44 = vsub.f32 %v3689_v25, %v1790_v4  ;;  %v1835_v16 = vmul.f32 1.442695, %v1815_v31 }
 0x7a0   : > { %v2121_v33 = vpop.xlane.xlu0 %2120  ;;  %2895 = vpow2.f32 %v2164_v26 }
 0x7a1   : > { %2897 = vpow2.f32 %v2162_v35  ;;  %v2148_v27 = vsub.f32 %v3693_v5, %v2121_v33  ;;  %v1837_v45 = vmul.f32 1.442695, %v1816_v44 }
 0x7a2   : > { %v2123_v38 = vpop.xlane.xlu1 %2122 }
 0x7a3   : > { %v3789_v9 = vpop.eup %2883  ;;  %v2168_v8 = vmul.f32 1.442695, %v2148_v27  ;;  %v2149_v55 = vsub.f32 %v3697_v18, %v2123_v38 }
 0x7a4   : > { %v1792_v29 = vpop.xlane.xlu0 %1791  ;;  %1863 = vadd.xlane.f32.xlu0 %v3789_v9 }
 0x7a5   : > { %v3792_v6 = vpop.eup %2885  ;;  %v1817_v58 = vsub.f32 %v3701_v54, %v1792_v29  ;;  %v2170_v43 = vmul.f32 1.442695, %v2149_v55 }
 0x7a6   : > { %1865 = vadd.xlane.f32.xlu1 %v3792_v6  ;;  %v1794_v48 = vpop.xlane.xlu1 %1793  ;;  %v3797_v49 = vpop.eup %2887 }
 0x7a7   : > { %v1839_v23 = vmul.f32 1.442695, %v1817_v58  ;;  %v1818_v12 = vsub.f32 %v3705_v19, %v1794_v48  ;;  %v3802_v36 = vpop.eup %2889 }
 0x7a8   : > { %v2125_v30 = vpop.xlane.xlu0 %2124  ;;  %1859 = vadd.xlane.f32.xlu0 %v3797_v49  ;;  %v3806_v22 = vpop.eup %2891 }
 0x7a9   : > { %2899 = vpow2.f32 %v1839_v23  ;;  %v1841_v54 = vmul.f32 1.442695, %v1818_v12  ;;  %v3810_v17 = vpop.eup %2893  ;;  %v2150_v5 = vsub.f32 %v3709_v2, %v2125_v30 }
 0x7aa   : > { %1861 = vadd.xlane.f32.xlu1 %v3802_v36  ;;  %v2127_v46 = vpop.xlane.xlu1 %2126  ;;  %v3814_v40 = vpop.eup %2895 }
 0x7ab   : > { %2901 = vpow2.f32 %v1841_v54  ;;  %v2151_v25 = vsub.f32 %v3713_v52, %v2127_v46  ;;  %v3818_v52 = vpop.eup %2897  ;;  %v2172_v32 = vmul.f32 1.442695, %v2150_v5 }
 0x7ac   : > { %v1796_v19 = vpop.xlane.xlu0 %1795  ;;  %2192 = vadd.xlane.f32.xlu0 %v3806_v22  ;;  %2903 = vpow2.f32 %v1835_v16 }
 0x7ad   : > { %2905 = vpow2.f32 %v1837_v45  ;;  %v2174_v24 = vmul.f32 1.442695, %v2151_v25  ;;  %v1819_v18 = vsub.f32 %v3717_v61, %v1796_v19 }
 0x7ae   : > { %2198 = vadd.xlane.f32.xlu1 %v3810_v17  ;;  %v1798_v7 = vpop.xlane.xlu1 %1797  ;;  %2907 = vpow2.f32 %v2168_v8 }
 0x7af   : > { %2909 = vpow2.f32 %v2174_v24  ;;  %v1820_v33 = vsub.f32 %v3721_v28, %v1798_v7  ;;  %v1843_v31 = vmul.f32 1.442695, %v1819_v18 }
 0x7b0   : > { %v2129_v53 = vpop.xlane.xlu0 %2128  ;;  %2196 = vadd.xlane.f32.xlu0 %v3814_v40  ;;  %2911 = vpow2.f32 %v2172_v32 }
 0x7b1   : > { %2913 = vpow2.f32 %v2170_v43  ;;  %v2152_v61 = vsub.f32 %v3725_v60, %v2129_v53  ;;  %v1845_v44 = vmul.f32 1.442695, %v1820_v33 }
 0x7b2   : > { %2194 = vadd.xlane.f32.xlu1 %v3818_v52  ;;  %v2131_v41 = vpop.xlane.xlu1 %2130 }
 0x7b3   : > { %v3821_v2 = vpop.eup %2899  ;;  %v2176_v12 = vmul.f32 1.442695, %v2152_v61  ;;  %v2153_v27 = vsub.f32 %v3729_v56, %v2131_v41 }
 0x7b4   : > { %v1800_v11 = vpop.xlane.xlu0 %1799  ;;  %1871 = vadd.xlane.f32.xlu0 %v3821_v2 }
 0x7b5   : > { %v3824_v14 = vpop.eup %2901  ;;  %v1821_v4 = vsub.f32 %v3733_v47, %v1800_v11  ;;  %v2178_v19 = vmul.f32 1.442695, %v2153_v27  ;;  %v1466_v27 = vld [vmem:[%s4013_s14] sm:$0xff] }
 0x7b6   : > { %1873 = vadd.xlane.f32.xlu1 %v3824_v14  ;;  %v1802_v10 = vpop.xlane.xlu1 %1801  ;;  %v3829_v13 = vpop.eup %2903 }
 0x7b7   : > { %v1847_v26 = vmul.f32 1.442695, %v1821_v4  ;;  %v1822_v38 = vsub.f32 %v3737_v50, %v1802_v10  ;;  %v3834_v29 = vpop.eup %2905 }
 0x7b8   : > { %v2133_v35 = vpop.xlane.xlu0 %2132  ;;  %1867 = vadd.xlane.f32.xlu0 %v3829_v13  ;;  %v3838_v48 = vpop.eup %2907 }
 0x7b9   : > { %2915 = vpow2.f32 %v1847_v26  ;;  %v1849_v47 = vmul.f32 1.442695, %v1822_v38  ;;  %v3842_v23 = vpop.eup %2909  ;;  %v2154_v60 = vsub.f32 %v3741_v59, %v2133_v35 }
 0x7ba   : > { %1869 = vadd.xlane.f32.xlu1 %v3834_v29  ;;  %v2135_v58 = vpop.xlane.xlu1 %2134  ;;  %v3846_v16 = vpop.eup %2911 }
 0x7bb   : > { %2917 = vpow2.f32 %v1849_v47  ;;  %v2155_v28 = vsub.f32 %v3745_v15, %v2135_v58  ;;  %v3850_v46 = vpop.eup %2913  ;;  %v2180_v45 = vmul.f32 1.442695, %v2154_v60 }
 0x7bc   : > { %2200 = vadd.xlane.f32.xlu0 %v3838_v48  ;;  %v1804_v50 = vpop.xlane.xlu0 %1803  ;;  %2919 = vpow2.f32 %v1843_v31 }
 0x7bd   : > { %2921 = vpow2.f32 %v1845_v44  ;;  %v2182_v54 = vmul.f32 1.442695, %v2155_v28  ;;  %v1823_v56 = vsub.f32 %v3749_v0, %v1804_v50 }
 0x7be   : > { %2206 = vadd.xlane.f32.xlu1 %v3842_v23  ;;  %v1806_v30 = vpop.xlane.xlu1 %1805  ;;  %2923 = vpow2.f32 %v2176_v12 }
 0x7bf   : > { %2925 = vpow2.f32 %v2182_v54  ;;  %v1824_v53 = vsub.f32 %v3753_v34, %v1806_v30  ;;  %v1851_v11 = vmul.f32 1.442695, %v1823_v56  ;;  %v1467_v30 = vld [vmem:[%s4013_s14 + $0x8] sm:$0xff]  ;;  %v1468_v54 = vld [vmem:[%s4014_s15] sm:$0xff] }
 0x7c0   : > { %2204 = vadd.xlane.f32.xlu0 %v3846_v16  ;;  %v2137_v15 = vpop.xlane.xlu0 %2136  ;;  %2927 = vpow2.f32 %v2180_v45  ;;  %v1470_v45 = vld [vmem:[%s4015_s16] sm:$0xff] }
 0x7c1   : > { %2929 = vpow2.f32 %v2178_v19  ;;  %v2156_v0 = vsub.f32 %v3757_v42, %v2137_v15  ;;  %v1853_v33 = vmul.f32 1.442695, %v1824_v53  ;;  %v1469_v15 = vld [vmem:[%s4014_s15 + $0x8] sm:$0xff] }
 0x7c2   : > { %2202 = vadd.xlane.f32.xlu1 %v3850_v46  ;;  %v2139_v25 = vpop.xlane.xlu1 %2138 }
 0x7c3   : > { %v3853_v59 = vpop.eup %2915  ;;  %v2184_v26 = vmul.f32 1.442695, %v2156_v0  ;;  %v2157_v35 = vsub.f32 %v3761_v62, %v2139_v25  ;;  %v1471_v25 = vld [vmem:[%s4015_s16 + $0x8] sm:$0xff] }
 0x7c4   : > { %1879 = vadd.xlane.f32.xlu0 %v3853_v59  ;;  %v1808_v8 = vpop.xlane.xlu0 %1807 }
 0x7c5   : > { %v3856_v5 = vpop.eup %2917  ;;  %v1825_v7 = vsub.f32 %v3765_v20, %v1808_v8  ;;  %v2186_v58 = vmul.f32 1.442695, %v2157_v35 }
 0x7c6   : > { %1881 = vadd.xlane.f32.xlu1 %v3856_v5  ;;  %v1810_v55 = vpop.xlane.xlu1 %1809  ;;  %v3861_v24 = vpop.eup %2919 }
 0x7c7   : > { %v1855_v32 = vmul.f32 1.442695, %v1825_v7  ;;  %v1826_v41 = vsub.f32 %v3769_v37, %v1810_v55  ;;  %v3866_v43 = vpop.eup %2921 }
 0x7c8   : > { %1875 = vadd.xlane.f32.xlu0 %v3861_v24  ;;  %v2141_v18 = vpop.xlane.xlu0 %2140  ;;  %v3870_v10 = vpop.eup %2923 }
 0x7c9   : > { %2931 = vpow2.f32 %v1855_v32  ;;  %v1857_v20 = vmul.f32 1.442695, %v1826_v41  ;;  %v3874_v37 = vpop.eup %2925  ;;  %v2158_v42 = vsub.f32 %v3773_v3, %v2141_v18 }
 0x7ca   : > { %1877 = vadd.xlane.f32.xlu1 %v3866_v43  ;;  %v2143_v4 = vpop.xlane.xlu1 %2142  ;;  %v3878_v38 = vpop.eup %2927 }
 0x7cb   : > { %2933 = vpow2.f32 %v1857_v20  ;;  %v2159_v34 = vsub.f32 %v3777_v39, %v2143_v4  ;;  %v3882_v61 = vpop.eup %2929  ;;  %v2188_v39 = vmul.f32 1.442695, %v2158_v42 }
 0x7cc   : > { %2208 = vadd.xlane.f32.xlu0 %v3870_v10  ;;  %2935 = vpow2.f32 %v1851_v11 }
 0x7cd   : > { %2937 = vpow2.f32 %v1853_v33  ;;  %v2190_v31 = vmul.f32 1.442695, %v2159_v34 }
 0x7ce   : > { %2214 = vadd.xlane.f32.xlu1 %v3874_v37  ;;  %2939 = vpow2.f32 %v2184_v26 }
 0x7cf   : > { %2941 = vpow2.f32 %v2190_v31 }
 0x7d0   : > { %2212 = vadd.xlane.f32.xlu0 %v3878_v38  ;;  %2943 = vpow2.f32 %v2188_v39 }
 0x7d1   : > { %2945 = vpow2.f32 %v2186_v58 }
 0x7d2   : > { %2210 = vadd.xlane.f32.xlu1 %v3882_v61 }
 0x7d3   : > { %v3885_v47 = vpop.eup %2931 }
 0x7d4   : > { %1887 = vadd.xlane.f32.xlu0 %v3885_v47 }
 0x7d5   : > { %v3888_v3 = vpop.eup %2933 }
 0x7d6   : > { %1889 = vadd.xlane.f32.xlu1 %v3888_v3  ;;  %v3891_v62 = vpop.eup %2935 }
 0x7d7   : > { %v3894_v44 = vpop.eup %2937 }
 0x7d8   : > { %1883 = vadd.xlane.f32.xlu0 %v3891_v62  ;;  %v3897_v28 = vpop.eup %2939 }
 0x7d9   : > { %v3900_v50 = vpop.eup %2941 }
 0x7da   : > { %1885 = vadd.xlane.f32.xlu1 %v3894_v44  ;;  %v3903_v12 = vpop.eup %2943 }
 0x7db   : > { %v3906_v60 = vpop.eup %2945 }
 0x7dc   : > { %2216 = vadd.xlane.f32.xlu0 %v3897_v28 }
 0x7de   : > { %2222 = vadd.xlane.f32.xlu1 %v3900_v50 }
 0x7e0   : > { %2220 = vadd.xlane.f32.xlu0 %v3903_v12 }
 0x7e2   : > { %2218 = vadd.xlane.f32.xlu1 %v3906_v60 }
 0x7f3   : > { %1579 = vperm.xlu1 %2752, %v1467_v30  }
 0x7f6   : > { %1574 = vperm.xlu0 %2751, %v1466_v27  }
 0x7f7   : > { %2311 = vperm.xlu1 %2752, %v1468_v54  }
 0x7fa   : > { %2316 = vperm.xlu0 %2751, %v1469_v15  }
 0x7fb   : > { %2325 = vperm.xlu1 %2752, %v1470_v45  }
 0x7fe   : > { %2330 = vperm.xlu0 %2751, %v1471_v25  }
 0x831   : > { %v1864_v19 = vpop.xlane.xlu0 %1863 }
 0x833   : > { %v1866_v8 = vpop.xlane.xlu1 %1865 }
 0x835   : > { %v1860_v56 = vpop.xlane.xlu0 %1859 }
 0x836   : > { %2947 = vrcp.f32 %v1860_v56 }
 0x837   : > { %v1862_v7 = vpop.xlane.xlu1 %1861 }
 0x838   : > { %2949 = vrcp.f32 %v1862_v7 }
 0x839   : > { %v2193_v55 = vpop.xlane.xlu0 %2192  ;;  %2951 = vrcp.f32 %v1866_v8 }
 0x83a   : > { %2953 = vrcp.f32 %v1864_v19 }
 0x83b   : > { %v2199_v53 = vpop.xlane.xlu1 %2198  ;;  %2955 = vrcp.f32 %v2193_v55 }
 0x83d   : > { %v2197_v32 = vpop.xlane.xlu0 %2196 }
 0x83f   : > { %v2195_v41 = vpop.xlane.xlu1 %2194 }
 0x840   : > { %v2948_v11 = vpop.eup %2947  ;;  %2957 = vrcp.f32 %v2195_v41 }
 0x841   : > { %v1872_v0 = vpop.xlane.xlu0 %1871  ;;  %v1907_v4 = vmul.f32 %v2948_v11, %v3797_v49  ;;  %2959 = vrcp.f32 %v2197_v32 }
 0x842   : > { %v2950_v20 = vpop.eup %2949  ;;  %2961 = vrcp.f32 %v2199_v53 }
 0x843   : > { %v1874_v18 = vpop.xlane.xlu1 %1873  ;;  %v1908_v33 = vmul.f32 %v2950_v20, %v3802_v36  ;;  %v2952_v42 = vpop.eup %2951 }
 0x844   : > { %v2954_v35 = vpop.eup %2953  ;;  %v1910_v30 = vmul.f32 %v2952_v42, %v3792_v6 }
 0x845   : > { %v1868_v34 = vpop.xlane.xlu0 %1867  ;;  %v1923_v26 = vpack.c.bf16 %v1908_v33, %v1907_v4  ;;  %v2956_v39 = vpop.eup %2955  ;;  %v1909_v36 = vmul.f32 %v2954_v35, %v3789_v9 }
 0x846   : > { %2963 = vrcp.f32 %v1868_v34  ;;  %v2240_v54 = vmul.f32 %v2956_v39, %v3806_v22 }
 0x847   : > { %2662 = vmatpush3.bf16.xpose.msra.mxu0 %v1923_v26  ;;  %v1870_v31 = vpop.xlane.xlu1 %1869  ;;  %v1924_v25 = vpack.c.bf16 %v1910_v30, %v1909_v36 }
 0x848   : > { %2965 = vrcp.f32 %v1870_v31  ;;  %2663 = vmatprep.subr.bf16.mxu0 %v3041_v21 }
 0x849   : > { %v2201_v58 = vpop.xlane.xlu0 %2200  ;;  %2967 = vrcp.f32 %v1874_v18 }
 0x84a   : > { %v2958_v27 = vpop.eup %2957  ;;  %2969 = vrcp.f32 %v1872_v0 }
 0x84b   : > { %v2207_v49 = vpop.xlane.xlu1 %2206  ;;  %v2241_v15 = vmul.f32 %v2958_v27, %v3818_v52  ;;  %v2960_v8 = vpop.eup %2959  ;;  %2971 = vrcp.f32 %v2201_v58 }
 0x84c   : > { %v2962_v56 = vpop.eup %2961  ;;  %v2242_v22 = vmul.f32 %v2960_v8, %v3814_v40 }
 0x84d   : > { %v2205_v45 = vpop.xlane.xlu0 %2204  ;;  %v2256_v19 = vpack.c.bf16 %v2241_v15, %v2240_v54  ;;  %v2243_v41 = vmul.f32 %v2962_v56, %v3810_v17 }
 0x84f   : > { %2664 = vmatpush3.bf16.xpose.msra.mxu0 %v1924_v25  ;;  %2700 = vmatpush3.bf16.xpose.msra.mxu1 %v2256_v19  ;;  %v2203_v7 = vpop.xlane.xlu1 %2202  ;;  %v2257_v20 = vpack.c.bf16 %v2243_v41, %v2242_v22 }
 0x850   : > { %v2964_v6 = vpop.eup %2963  ;;  %2973 = vrcp.f32 %v2203_v7  ;;  %2665 = vmatprep.subr.bf16.mxu0 %v3041_v21  ;;  %2701 = vmatprep.subr.bf16.mxu1 %v3041_v21 }
 0x851   : > { %v1880_v9 = vpop.xlane.xlu0 %1879  ;;  %v1911_v53 = vmul.f32 %v2964_v6, %v3829_v13  ;;  %2975 = vrcp.f32 %v2205_v45 }
 0x852   : > { %v2966_v52 = vpop.eup %2965  ;;  %2977 = vrcp.f32 %v2207_v49 }
 0x853   : > { %v1882_v55 = vpop.xlane.xlu1 %1881  ;;  %v1912_v32 = vmul.f32 %v2966_v52, %v3834_v29  ;;  %v2968_v18 = vpop.eup %2967 }
 0x854   : > { %v2970_v4 = vpop.eup %2969  ;;  %v1914_v17 = vmul.f32 %v2968_v18, %v3824_v14 }
 0x855   : > { %v1876_v11 = vpop.xlane.xlu0 %1875  ;;  %v1925_v0 = vpack.c.bf16 %v1912_v32, %v1911_v53  ;;  %v2972_v40 = vpop.eup %2971  ;;  %v1913_v26 = vmul.f32 %v2970_v4, %v3821_v2 }
 0x856   : > { %2979 = vrcp.f32 %v1876_v11  ;;  %v2244_v42 = vmul.f32 %v2972_v40, %v3838_v48 }
 0x857   : > { %2666 = vmatpush3.bf16.xpose.msra.mxu0 %v1925_v0  ;;  %2702 = vmatpush3.bf16.xpose.msra.mxu1 %v2257_v20  ;;  %v1878_v33 = vpop.xlane.xlu1 %1877  ;;  %v1926_v39 = vpack.c.bf16 %v1914_v17, %v1913_v26 }
 0x858   : > { %2981 = vrcp.f32 %v1878_v33  ;;  %2667 = vmatprep.subr.bf16.mxu0 %v3041_v21  ;;  %2703 = vmatprep.subr.bf16.mxu1 %v3041_v21 }
 0x859   : > { %v2209_v13 = vpop.xlane.xlu0 %2208  ;;  %2983 = vrcp.f32 %v1882_v55 }
 0x85a   : > { %v2974_v29 = vpop.eup %2973  ;;  %2985 = vrcp.f32 %v1880_v9 }
 0x85b   : > { %v2215_v34 = vpop.xlane.xlu1 %2214  ;;  %v2245_v35 = vmul.f32 %v2974_v29, %v3850_v46  ;;  %v2976_v30 = vpop.eup %2975  ;;  %2987 = vrcp.f32 %v2209_v13 }
 0x85c   : > { %v2978_v27 = vpop.eup %2977  ;;  %v2246_v48 = vmul.f32 %v2976_v30, %v3846_v16 }
 0x85d   : > { %v2213_v31 = vpop.xlane.xlu0 %2212  ;;  %v2258_v58 = vpack.c.bf16 %v2245_v35, %v2244_v42  ;;  %v2247_v45 = vmul.f32 %v2978_v27, %v3842_v23 }
 0x85f   : > { %2668 = vmatpush3.bf16.xpose.msra.mxu0 %v1926_v39  ;;  %2704 = vmatpush3.bf16.xpose.msra.mxu1 %v2258_v58  ;;  %v2211_v49 = vpop.xlane.xlu1 %2210  ;;  %v2259_v8 = vpack.c.bf16 %v2247_v45, %v2246_v48 }
 0x860   : > { %v2980_v14 = vpop.eup %2979  ;;  %2989 = vrcp.f32 %v2211_v49  ;;  %2669 = vmatprep.subr.bf16.mxu0 %v3041_v21  ;;  %2705 = vmatprep.subr.bf16.mxu1 %v3041_v21 }
 0x861   : > { %v1888_v2 = vpop.xlane.xlu0 %1887  ;;  %v1915_v54 = vmul.f32 %v2980_v14, %v3861_v24  ;;  %2991 = vrcp.f32 %v2213_v31 }
 0x862   : > { %v2982_v46 = vpop.eup %2981  ;;  %2993 = vrcp.f32 %v2215_v34 }
 0x863   : > { %v1890_v36 = vpop.xlane.xlu1 %1889  ;;  %v1916_v15 = vmul.f32 %v2982_v46, %v3866_v43  ;;  %v2984_v56 = vpop.eup %2983 }
 0x864   : > { %v2986_v7 = vpop.eup %2985  ;;  %v1918_v24 = vmul.f32 %v2984_v56, %v3856_v5 }
 0x865   : > { %v1884_v25 = vpop.xlane.xlu0 %1883  ;;  %v1927_v19 = vpack.c.bf16 %v1916_v15, %v1915_v54  ;;  %v2988_v16 = vpop.eup %2987  ;;  %v1917_v22 = vmul.f32 %v2986_v7, %v3853_v59 }
 0x866   : > { %2995 = vrcp.f32 %v1884_v25  ;;  %v2248_v52 = vmul.f32 %v2988_v16, %v3870_v10  ;;  %v3011_v25 = vld [vmem:[%s3185_s22] sm:$0xff] }
 0x867   : > { %2670 = vmatpush3.bf16.xpose.msra.mxu0 %v1927_v19  ;;  %2706 = vmatpush3.bf16.xpose.msra.mxu1 %v2259_v8  ;;  %v1886_v6 = vpop.xlane.xlu1 %1885  ;;  %v1928_v53 = vpack.c.bf16 %v1918_v24, %v1917_v22 }
 0x868   : > { %2997 = vrcp.f32 %v1886_v6  ;;  %2671 = vmatprep.subr.bf16.mxu0 %v3041_v21  ;;  %2707 = vmatprep.subr.bf16.mxu1 %v3041_v21  ;;  %v3012_v6 = vld [vmem:[%s3185_s22 + $0x10] sm:$0xff] }
 0x869   : > { %v2217_v43 = vpop.xlane.xlu0 %2216  ;;  %2999 = vrcp.f32 %v1890_v36 }
 0x86a   : > { %v2990_v23 = vpop.eup %2989  ;;  %3001 = vrcp.f32 %v1888_v2 }
 0x86b   : > { %v2223_v9 = vpop.xlane.xlu1 %2222  ;;  %v2249_v55 = vmul.f32 %v2990_v23, %v3882_v61  ;;  %v2992_v41 = vpop.eup %2991  ;;  %3003 = vrcp.f32 %v2217_v43 }
 0x86c   : > { %v2994_v11 = vpop.eup %2993  ;;  %v2250_v10 = vmul.f32 %v2992_v41, %v3878_v38  ;;  %v3013_v41 = vld [vmem:[%s3185_s22 + $0x8] sm:$0xff] }
 0x86d   : > { %v2260_v32 = vpack.c.bf16 %v2249_v55, %v2248_v52  ;;  %v2221_v59 = vpop.xlane.xlu0 %2220  ;;  %v2251_v33 = vmul.f32 %v2994_v11, %v3874_v37 }
 0x86f   : > { %2672 = vmatpush3.bf16.xpose.msra.mxu0 %v1928_v53  ;;  %2708 = vmatpush3.bf16.xpose.msra.mxu1 %v2260_v32  ;;  %v2219_v0 = vpop.xlane.xlu1 %2218  ;;  %v2261_v17 = vpack.c.bf16 %v2251_v33, %v2250_v10 }
 0x870   : > { %v2996_v5 = vpop.eup %2995  ;;  %3005 = vrcp.f32 %v2219_v0  ;;  %2673 = vmatprep.subr.bf16.mxu0 %v3041_v21  ;;  %2709 = vmatprep.subr.bf16.mxu1 %v3041_v21 }
 0x871   : > { %v1919_v18 = vmul.f32 %v2996_v5, %v3891_v62  ;;  %3007 = vrcp.f32 %v2221_v59  ;;  %v3014_v59 = vld [vmem:[%s3185_s22 + $0x18] sm:$0xff] }
 0x872   : > { %v2998_v61 = vpop.eup %2997  ;;  %3009 = vrcp.f32 %v2223_v9 }
 0x873   : > { %v1580_v20 = vpop.permute.xlu1 %1579  ;;  %v1920_v4 = vmul.f32 %v2998_v61, %v3894_v44  ;;  %v3000_v29 = vpop.eup %2999 }
 0x874   : > { %v1629_v34 = vadd.f32 %v3629_v1, %v1580_v20  ;;  %v1631_v26 = vadd.f32 %v3631_v63, %v1580_v20  ;;  %v3002_v35 = vpop.eup %3001  ;;  %v1922_v31 = vmul.f32 %v3000_v29, %v3888_v3 }
 0x875   : > { %v1575_v40 = vpop.permute.xlu0 %1574  ;;  %v1929_v13 = vpack.c.bf16 %v1920_v4, %v1919_v18  ;;  %v3004_v62 = vpop.eup %3003  ;;  %v1921_v1 = vmul.f32 %v3002_v35, %v3885_v47 }
 0x876   : > { %v1625_v38 = vadd.f32 %v3625_v57, %v1575_v40  ;;  %v1627_v42 = vadd.f32 %v3627_v51, %v1575_v40  ;;  %v2252_v63 = vmul.f32 %v3004_v62, %v3897_v28 }
 0x877   : > { %2674 = vmatpush3.bf16.xpose.msra.mxu0 %v1929_v13  ;;  %2710 = vmatpush3.bf16.xpose.msra.mxu1 %v2261_v17  ;;  %v1930_v51 = vpack.c.bf16 %v1922_v31, %v1921_v1  ;;  %v2312_v47 = vpop.permute.xlu1 %2311 }
 0x878   : > { %v1637_v44 = vpack.c.bf16 %v1629_v34, %v1625_v38  ;;  %v1638_v37 = vpack.c.bf16 %v1631_v26, %v1627_v42  ;;  %2675 = vmatprep.subr.bf16.mxu0 %v3041_v21  ;;  %2711 = vmatprep.subr.bf16.mxu1 %v3041_v21 }
 0x879   : > { %v2317_v28 = vpop.permute.xlu0 %2316 }
 0x87a   : > { %v3006_v39 = vpop.eup %3005 }
 0x87b   : > { %v2253_v57 = vmul.f32 %v3006_v39, %v3906_v60  ;;  %v3008_v30 = vpop.eup %3007  ;;  %v2326_v15 = vpop.permute.xlu1 %2325 }
 0x87c   : > { %v3010_v27 = vpop.eup %3009  ;;  %v2254_v49 = vmul.f32 %v3008_v30, %v3903_v12 }
 0x87d   : > { %v2262_v58 = vpack.c.bf16 %v2253_v57, %v2252_v63  ;;  %v2255_v14 = vmul.f32 %v3010_v27, %v3900_v50  ;;  %v2331_v50 = vpop.permute.xlu0 %2330 }
 0x87f   : > { %2676 = vmatpush3.bf16.xpose.msra.mxu0 %v1930_v51  ;;  %2712 = vmatpush3.bf16.xpose.msra.mxu1 %v2262_v58  ;;  %v2263_v3 = vpack.c.bf16 %v2255_v14, %v2254_v49 }
 0x880   : > { %2713 = vmatprep.subr.bf16.mxu1 %v3041_v21 }
 0x886   : > { %2678 = vmatmul.mubr.bf16.vlgmr.msra.gmra.mrb[40].mxu0 %v1637_v44 }
 0x887   : > { %2714 = vmatpush3.bf16.xpose.msra.mxu1 %v2263_v3 }
 0x88e   : > { %2716 = vmatmul.mubr.bf16.vlgmr.msra.gmra.mrb[56].mxu1 %v1638_v37 }
 0x959   : > { %v1965_v60 = vpop.f32.mrb[40].mxu0 }
 0x95a   : > { %v2305_v2 = vmax.f32 %v1965_v60, 0.0  ;;  %v2679_v48 = vpop.f32.mrb[41].mxu0 }
 0x95b   : > { %v1968_v46 = vpop.f32.mrb[42].mxu0 }
 0x95c   : > { %v2319_v36 = vmul.f32 %v2312_v47, %v2305_v2  ;;  %v2307_v54 = vmax.f32 %v1968_v46, 0.0  ;;  %v2680_v21 = vpop.f32.mrb[43].mxu0 }
 0x95e   : > { %v2333_v12 = vadd.f32 %v2326_v15, %v2319_v36  ;;  %v2321_v45 = vmul.f32 %v2317_v28, %v2307_v54 }
 0x960   : > { %v2337_v19 = vadd.f32 %v3011_v25, %v2333_v12  ;;  %v2335_v8 = vadd.f32 %v2331_v50, %v2321_v45 }
 0x961   : > { %v2298_v56 = vpop.f32.mrb[56].mxu1 }
 0x962   : > { %v2341_v7 = vmax.f32 %v2337_v19, 0.0  ;;  %v2339_v16 = vadd.f32 %v3012_v6, %v2335_v8  ;;  %v2306_v24 = vmax.f32 %v2298_v56, 0.0  ;;  %v2717_v23 = vpop.f32.mrb[57].mxu1 }
 0x963   : > { %v2301_v43 = vpop.f32.mrb[58].mxu1 }
 0x964   : > { %2345 = vst [vmem:[%s568_s2] sm:$0xff] %v2341_v7  ;;  %v2343_v9 = vmax.f32 %v2339_v16, 0.0  ;;  %v2320_v22 = vmul.f32 %v2312_v47, %v2306_v24  ;;  %v2308_v52 = vmax.f32 %v2301_v43, 0.0  ;;  %v2718_v55 = vpop.f32.mrb[59].mxu1 }
 0x966   : > { %2347 = vst [vmem:[%s568_s2 + $0x10] sm:$0xff] %v2343_v9  ;;  %v2334_v53 = vadd.f32 %v2326_v15, %v2320_v22  ;;  %v2322_v32 = vmul.f32 %v2317_v28, %v2308_v52 }
 0x968   : > { %v2338_v11 = vadd.f32 %v3013_v41, %v2334_v53  ;;  %v2336_v0 = vadd.f32 %v2331_v50, %v2322_v32  ;;  %2355 = sbr.rel (!%p3163_p5) target bundleno = 2423 (0x977), region = 115 }
 0x96a   : > { %v2342_v5 = vmax.f32 %v2338_v11, 0.0  ;;  %v2340_v10 = vadd.f32 %v3014_v59, %v2336_v0 }
 0x96b   : > { %v2371_v20 = vld [vmem:[%s568_s2] sm:$0xff] (%p3163_p5) }
 0x96c   : > { %2346 = vst [vmem:[%s568_s2 + $0x8] sm:$0xff] %v2342_v5  ;;  %v2344_v61 = vmax.f32 %v2340_v10, 0.0  ;;  %2372 = vst [vmem:[%s2358_s19] sm:$0xff] (%p3163_p5), %v2371_v20 }
 0x96d   : > { %v2375_v4 = vld [vmem:[%s568_s2 + $0x10] sm:$0xff] (%p3163_p5) }
 0x96e   : > { %2348 = vst [vmem:[%s568_s2 + $0x18] sm:$0xff] %v2344_v61  ;;  %2376 = vst [vmem:[%s2358_s19 + $0x20] sm:$0xff] (%p3163_p5), %v2375_v4 }
 0x973   : > { %v2373_v18 = vld [vmem:[%s568_s2 + $0x8] sm:$0xff] }
 0x974   : > { %2374 = vst [vmem:[%s2358_s19 + $0x8] sm:$0xff] %v2373_v18 }
 0x975   : > { %v2377_v33 = vld [vmem:[%s568_s2 + $0x18] sm:$0xff] }
 0x976   : > { %2378 = vst [vmem:[%s2358_s19 + $0x28] sm:$0xff] %v2377_v33 }
 0x977 PF: > { %p24_p10 = scmp.ge.s32.totalorder %s3150_s28, 4   ;;  %s4028_s24 = smov %s3033_s25 }
 0x978   : > { %s4029_s25 = smov %s3161_s30  ;;  %s4030_s26 = smov %s3150_s28 }
 0x979   :  { %26 = sbr.rel (!%p24_p10) target bundleno = 7 (0x7), region = 169 }

</bundles_post_ra>
